<compile_context>
chip_gen: v6e
topology: v6e:2x2x1
jax: 0.10.0
libtpu: 0.0.40
codegen_flags: <defaults>
</compile_context>

<pallas_src>
import math
from dataclasses import dataclass
from functools import partial

import jax
import jax.numpy as jnp
from jax.experimental import pallas as pl
from jax.experimental.pallas import tpu as pltpu


@dataclass
class GPTConfig:
    block_size: int = 16
    vocab_size: int = 256
    n_layer: int = 2
    n_head: int = 4
    n_embd: int = 128


# ----------------------------- helpers -----------------------------

def _cparams(*sem):
    return pltpu.CompilerParams(
        dimension_semantics=tuple(sem),
        vmem_limit_bytes=48 * 1024 * 1024,   # budget against v7x's 64 MiB VMEM
    )


def _row_tile(n):
    # largest "nice" row tile that divides n (keeps per-step VMEM small, enables pipelining)
    for t in (512, 256, 128, 64, 32, 16, 8):
        if n >= t and n % t == 0:
            return t
    return n


def _vocab_tile(v):
    for t in (4096, 2048, 1024, 512, 256, 128):
        if v % t == 0:
            return t
    return v


def _layernorm_f32(x, g, b, eps=1e-5):
    mean = jnp.mean(x, axis=-1, keepdims=True)
    var = jnp.mean(jnp.square(x - mean), axis=-1, keepdims=True)
    return (x - mean) * jax.lax.rsqrt(var + eps) * g + b


# ----------------------------- Pallas kernels -----------------------------

def attn_branch_kernel(x_ref, g_ref, b_ref, wqkv_ref, bqkv_ref,
                       wproj_ref, bproj_ref, o_ref, *, n_head, scale):
    """Fused attention branch for one batch element per grid step:
        o = x + c_proj( CausalMHA( c_attn( LN1(x) ) ) )
    qkv / per-head scores / head outputs never touch HBM."""
    x = x_ref[0].astype(jnp.float32)                              # (T, C)
    T, C = x.shape
    hd = C // n_head

    h = _layernorm_f32(x, g_ref[...], b_ref[...])
    qkv = (
        jnp.dot(h.astype(wqkv_ref.dtype), wqkv_ref[...],
                preferred_element_type=jnp.float32)
        + bqkv_ref[...]
    ).astype(jnp.bfloat16)                                        # (T, 3C)

    row = jax.lax.broadcasted_iota(jnp.int32, (T, T), 0)
    col = jax.lax.broadcasted_iota(jnp.int32, (T, T), 1)
    causal = col <= row

    ys = []
    for hh in range(n_head):
        q = qkv[:, hh * hd:(hh + 1) * hd]
        k = qkv[:, C + hh * hd:C + (hh + 1) * hd]
        v = qkv[:, 2 * C + hh * hd:2 * C + (hh + 1) * hd]
        # q @ k.T without materialising a transpose: contract last dims directly.
        att = jax.lax.dot_general(
            q, k, (((1,), (1,)), ((), ())), preferred_element_type=jnp.float32
        ) * scale
        att = jnp.where(causal, att, -1e30)                       # large finite negative
        att = att - jnp.max(att, axis=-1, keepdims=True)
        p = jnp.exp(att)
        p = p * pl.reciprocal(jnp.sum(p, axis=-1, keepdims=True), approx=True)
        ys.append(jnp.dot(p.astype(v.dtype), v, preferred_element_type=jnp.float32))
    y = jnp.concatenate(ys, axis=-1)                              # (T, C) fp32

    out = (
        x
        + jnp.dot(y.astype(wproj_ref.dtype), wproj_ref[...],
                  preferred_element_type=jnp.float32)
        + bproj_ref[...]
    )
    o_ref[0] = out.astype(o_ref.dtype)
    # TODO(synk): for block_size >> a few hundred, replace the dense (T,T) score matrix
    # with a KV-tiled online-softmax (flash) inner loop to cap VMEM.


def mlp_block_kernel(x_ref, g_ref, b_ref, w1_ref, b1_ref, w2_ref, b2_ref, o_ref):
    """Fused MLP branch: o = x + c_proj(GELU_tanh(c_fc(LN2(x)))).
    The (tile_n, 4C) intermediate lives only in VMEM/vregs, never in HBM."""
    x = x_ref[...].astype(jnp.float32)
    h = _layernorm_f32(x, g_ref[...], b_ref[...])
    a = (
        jnp.dot(h.astype(w1_ref.dtype), w1_ref[...], preferred_element_type=jnp.float32)
        + b1_ref[...]
    )
    c = math.sqrt(2.0 / math.pi)
    gelu = 0.5 * a * (1.0 + jnp.tanh(c * (a + 0.044715 * a * a * a)))
    m = (
        jnp.dot(gelu.astype(w2_ref.dtype), w2_ref[...], preferred_element_type=jnp.float32)
        + b2_ref[...]
    )
    o_ref[...] = (x + m).astype(o_ref.dtype)


def ln_lmhead_kernel(x_ref, g_ref, b_ref, wte_ref, o_ref):
    """Fused final LayerNorm + tied lm_head: logits = LN_f(x) @ wte.T
    (wte contracted on its second axis — no transposed copy materialised)."""
    x = x_ref[...].astype(jnp.float32)
    h = _layernorm_f32(x, g_ref[...], b_ref[...]).astype(wte_ref.dtype)
    o_ref[...] = jax.lax.dot_general(
        h, wte_ref[...], (((1,), (1,)), ((), ())), preferred_element_type=jnp.float32
    ).astype(o_ref.dtype)


# ----------------------------- Pallas wrappers -----------------------------

def attn_branch(x, g, b, wqkv, bqkv, wproj, bproj, B, T, n_head):
    C = x.shape[-1]
    scale = 1.0 / math.sqrt(C // n_head)
    out = pl.pallas_call(
        partial(attn_branch_kernel, n_head=n_head, scale=scale),
        out_shape=jax.ShapeDtypeStruct((B, T, C), x.dtype),
        grid=(B,),
        in_specs=[
            pl.BlockSpec((1, T, C), lambda i: (i, 0, 0)),
            pl.BlockSpec((1, C), lambda i: (0, 0)),
            pl.BlockSpec((1, C), lambda i: (0, 0)),
            pl.BlockSpec((C, 3 * C), lambda i: (0, 0)),     # weights stay VMEM-resident
            pl.BlockSpec((1, 3 * C), lambda i: (0, 0)),
            pl.BlockSpec((C, C), lambda i: (0, 0)),
            pl.BlockSpec((1, C), lambda i: (0, 0)),
        ],
        out_specs=pl.BlockSpec((1, T, C), lambda i: (i, 0, 0)),
        compiler_params=_cparams("parallel"),
    )(x.reshape(B, T, C), g.reshape(1, C), b.reshape(1, C),
      wqkv, bqkv.reshape(1, 3 * C), wproj, bproj.reshape(1, C))
    return out.reshape(B * T, C)


def mlp_block(x, g, b, w1, b1, w2, b2):
    N, C = x.shape
    Ch = w1.shape[1]
    tn = _row_tile(N)
    return pl.pallas_call(
        mlp_block_kernel,
        out_shape=jax.ShapeDtypeStruct((N, C), x.dtype),
        grid=(N // tn,),
        in_specs=[
            pl.BlockSpec((tn, C), lambda i: (i, 0)),
            pl.BlockSpec((1, C), lambda i: (0, 0)),
            pl.BlockSpec((1, C), lambda i: (0, 0)),
            pl.BlockSpec((C, Ch), lambda i: (0, 0)),
            pl.BlockSpec((1, Ch), lambda i: (0, 0)),
            pl.BlockSpec((Ch, C), lambda i: (0, 0)),
            pl.BlockSpec((1, C), lambda i: (0, 0)),
        ],
        out_specs=pl.BlockSpec((tn, C), lambda i: (i, 0)),
        compiler_params=_cparams("parallel"),
    )(x, g.reshape(1, C), b.reshape(1, C), w1, b1.reshape(1, Ch), w2, b2.reshape(1, C))


def ln_lm_head(x, g, b, wte):
    N, C = x.shape
    V = wte.shape[0]
    tn = _row_tile(N)
    tv = _vocab_tile(V)
    return pl.pallas_call(
        ln_lmhead_kernel,
        out_shape=jax.ShapeDtypeStruct((N, V), jnp.float32),
        grid=(N // tn, V // tv),
        in_specs=[
            pl.BlockSpec((tn, C), lambda i, j: (i, 0)),
            pl.BlockSpec((1, C), lambda i, j: (0, 0)),
            pl.BlockSpec((1, C), lambda i, j: (0, 0)),
            pl.BlockSpec((tv, C), lambda i, j: (j, 0)),
        ],
        out_specs=pl.BlockSpec((tn, tv), lambda i, j: (i, j)),
        compiler_params=_cparams("parallel", "parallel"),
    )(x, g.reshape(1, C), b.reshape(1, C), wte)


# ----------------------------- model (minimal JAX glue) -----------------------------

def init_params(key, cfg: GPTConfig):
    C, V, BS, L = cfg.n_embd, cfg.vocab_size, cfg.block_size, cfg.n_layer
    std = 0.02

    def normal(k, shape):
        return (std * jax.random.normal(k, shape)).astype(jnp.float32)

    keys = iter(jax.random.split(key, 4 + 6 * L))
    wte = normal(next(keys), (V, C))
    params = {
        "wte": wte,                                  # fp32 for the embedding gather
        "wte_lm": wte.astype(jnp.bfloat16),          # tied lm_head weight in matmul dtype
        "wpe": normal(next(keys), (BS, C)),
        "ln_f_g": jnp.ones((C,), jnp.float32),
        "ln_f_b": jnp.zeros((C,), jnp.float32),
        "blocks": [],
    }
    for _ in range(L):
        blk = {
            "ln1_g": jnp.ones((C,), jnp.float32),
            "ln1_b": jnp.zeros((C,), jnp.float32),
            "attn_w": normal(next(keys), (C, 3 * C)).astype(jnp.bfloat16),
            "attn_b": jnp.zeros((3 * C,), jnp.float32),
            "proj_w": normal(next(keys), (C, C)).astype(jnp.bfloat16),
            "proj_b": jnp.zeros((C,), jnp.float32),
            "ln2_g": jnp.ones((C,), jnp.float32),
            "ln2_b": jnp.zeros((C,), jnp.float32),
            "fc_w": normal(next(keys), (C, 4 * C)).astype(jnp.bfloat16),
            "fc_b": jnp.zeros((4 * C,), jnp.float32),
            "mlp_proj_w": normal(next(keys), (4 * C, C)).astype(jnp.bfloat16),
            "mlp_proj_b": jnp.zeros((C,), jnp.float32),
        }
        params["blocks"].append(blk)
    return params


def transformer_block(x, p, cfg: GPTConfig, B, T):
    # attention branch: LN1 + QKV + causal MHA + out-proj + residual in ONE kernel
    x = attn_branch(x, p["ln1_g"], p["ln1_b"], p["attn_w"], p["attn_b"],
                    p["proj_w"], p["proj_b"], B, T, cfg.n_head)
    # MLP branch: LN2 + c_fc + GELU + c_proj + residual in ONE kernel
    x = mlp_block(x, p["ln2_g"], p["ln2_b"], p["fc_w"], p["fc_b"],
                  p["mlp_proj_w"], p["mlp_proj_b"])
    return x


def gpt_forward(params, idx, cfg: GPTConfig):
    B, T = idx.shape
    assert T <= cfg.block_size
    C = cfg.n_embd
    tok_emb = params["wte"][idx]                     # (B, T, C) gather — JAX glue
    pos_emb = params["wpe"][:T]                      # (T, C)
    x = (tok_emb + pos_emb[None, :, :]).reshape(B * T, C).astype(jnp.float32)
    for blk in params["blocks"]:
        x = transformer_block(x, blk, cfg, B, T)
    logits = ln_lm_head(x, params["ln_f_g"], params["ln_f_b"], params["wte_lm"])
    return logits.reshape(B, T, cfg.vocab_size)
    # TODO(synk): cross-entropy loss path (targets=...) not implemented; forward returns logits only.


# ----------------------------- pure-JAX reference (for correctness check) -----------------

def gpt_forward_ref(params, idx, cfg: GPTConfig):
    B, T = idx.shape
    C, H = cfg.n_embd, cfg.n_head
    hd = C // H
    x = (params["wte"][idx] + params["wpe"][:T][None]).astype(jnp.float32)   # (B,T,C)
    mask = jnp.tril(jnp.ones((T, T), bool))
    for p in params["blocks"]:
        h = _layernorm_f32(x, p["ln1_g"], p["ln1_b"])
        qkv = (jnp.dot(h.astype(jnp.bfloat16).reshape(B * T, C), p["attn_w"],
                       preferred_element_type=jnp.float32).reshape(B, T, 3 * C)
               + p["attn_b"]).astype(jnp.bfloat16)
        q, k, v = qkv[..., :C], qkv[..., C:2 * C], qkv[..., 2 * C:]
        q = q.reshape(B, T, H, hd).transpose(0, 2, 1, 3)
        k = k.reshape(B, T, H, hd).transpose(0, 2, 1, 3)
        v = v.reshape(B, T, H, hd).transpose(0, 2, 1, 3)
        att = jnp.einsum('bhqd,bhkd->bhqk', q, k,
                         preferred_element_type=jnp.float32) / math.sqrt(hd)
        att = jnp.where(mask, att, -1e30)
        att = jax.nn.softmax(att, axis=-1)
        y = jnp.einsum('bhqk,bhkd->bhqd', att.astype(jnp.bfloat16), v,
                       preferred_element_type=jnp.float32)
        y = y.transpose(0, 2, 1, 3).reshape(B, T, C)
        x = x + (jnp.dot(y.astype(jnp.bfloat16).reshape(B * T, C), p["proj_w"],
                         preferred_element_type=jnp.float32).reshape(B, T, C)
                 + p["proj_b"])
        h2 = _layernorm_f32(x, p["ln2_g"], p["ln2_b"])
        a = (jnp.dot(h2.astype(jnp.bfloat16).reshape(B * T, C), p["fc_w"],
                     preferred_element_type=jnp.float32) + p["fc_b"])
        c = math.sqrt(2.0 / math.pi)
        gelu = 0.5 * a * (1.0 + jnp.tanh(c * (a + 0.044715 * a * a * a)))
        m = (jnp.dot(gelu.astype(jnp.bfloat16), p["mlp_proj_w"],
                     preferred_element_type=jnp.float32) + p["mlp_proj_b"])
        x = x + m.reshape(B, T, C)
    hf = _layernorm_f32(x, params["ln_f_g"], params["ln_f_b"])
    logits = jnp.dot(hf.astype(jnp.bfloat16).reshape(B * T, C), params["wte_lm"].T,
                     preferred_element_type=jnp.float32)
    return logits.reshape(B, T, cfg.vocab_size)


if __name__ == "__main__":
    cfg = GPTConfig(block_size=16, vocab_size=256, n_layer=2, n_head=4, n_embd=128)
    key = jax.random.PRNGKey(0)
    params = init_params(key, cfg)

    B, T = 2, 8
    idx = jax.random.randint(
        jax.random.fold_in(key, 1234), (B, T), 0, cfg.vocab_size, dtype=jnp.int32
    )

    logits = jax.jit(partial(gpt_forward, cfg=cfg))(params, idx)
    jax.block_until_ready(logits)
    assert logits.shape == (B, T, cfg.vocab_size)
    assert bool(jnp.all(jnp.isfinite(logits)))

    # correctness vs a pure-JAX reference mirroring the same mixed-precision recipe
    ref = jax.jit(partial(gpt_forward_ref, cfg=cfg))(params, idx)
    jax.block_until_ready(ref)
    max_diff = float(jnp.max(jnp.abs(logits - ref)))
    assert max_diff < 1e-2, f"mismatch vs reference: max |diff| = {max_diff}"

    print("KERNEL_OK")
</pallas_src>

<mosaic_0001>
module attributes {stable_mosaic.version = 11 : i64} {
  func.func @mlp_block_kernel(%arg0: i32, %arg1: memref<16x128xf32, #tpu.memory_space<vmem>>, %arg2: memref<1x128xf32, #tpu.memory_space<vmem>>, %arg3: memref<1x128xf32, #tpu.memory_space<vmem>>, %arg4: memref<128x512xbf16, #tpu.memory_space<vmem>>, %arg5: memref<1x512xf32, #tpu.memory_space<vmem>>, %arg6: memref<512x128xbf16, #tpu.memory_space<vmem>>, %arg7: memref<1x128xf32, #tpu.memory_space<vmem>>, %arg8: memref<16x128xf32, #tpu.memory_space<vmem>>) attributes {dimension_semantics = [#tpu.dimension_semantics<parallel>], iteration_bounds = array<i64: 1>, scalar_prefetch = 0 : i64, scratch_operands = 0 : i64, tpu.core_type = #tpu.core_type<tc>, window_params = [{transform_indices = @transform_0, window_bounds = array<i64: 16, 128>}, {pipeline_mode = #tpu.pipeline_mode<synchronous>, transform_indices = @transform_1, window_bounds = array<i64: 1, 128>}, {pipeline_mode = #tpu.pipeline_mode<synchronous>, transform_indices = @transform_2, window_bounds = array<i64: 1, 128>}, {pipeline_mode = #tpu.pipeline_mode<synchronous>, transform_indices = @transform_3, window_bounds = array<i64: 128, 512>}, {pipeline_mode = #tpu.pipeline_mode<synchronous>, transform_indices = @transform_4, window_bounds = array<i64: 1, 512>}, {pipeline_mode = #tpu.pipeline_mode<synchronous>, transform_indices = @transform_5, window_bounds = array<i64: 512, 128>}, {pipeline_mode = #tpu.pipeline_mode<synchronous>, transform_indices = @transform_6, window_bounds = array<i64: 1, 128>}, {transform_indices = @transform_7, window_bounds = array<i64: 16, 128>}]} {
    %c0 = arith.constant 0 : index
    %c0_0 = arith.constant 0 : index
    %0 = vector.load %arg1[%c0, %c0_0] : memref<16x128xf32, #tpu.memory_space<vmem>>, vector<16x128xf32>
    %c0_1 = arith.constant 0 : index
    %c0_2 = arith.constant 0 : index
    %1 = vector.load %arg2[%c0_1, %c0_2] : memref<1x128xf32, #tpu.memory_space<vmem>>, vector<1x128xf32>
    %c0_3 = arith.constant 0 : index
    %c0_4 = arith.constant 0 : index
    %2 = vector.load %arg3[%c0_3, %c0_4] : memref<1x128xf32, #tpu.memory_space<vmem>>, vector<1x128xf32>
    %cst = arith.constant dense<0.000000e+00> : vector<16xf32>
    %3 = vector.multi_reduction <add>, %0, %cst [1] : vector<16x128xf32> to vector<16xf32>
    %4 = vector.shape_cast %3 : vector<16xf32> to vector<16x1xf32>
    %cst_5 = arith.constant 1.280000e+02 : f32
    %5 = vector.broadcast %cst_5 : f32 to vector<16x1xf32>
    %6 = arith.divf %4, %5 : vector<16x1xf32>
    %7 = vector.broadcast %6 : vector<16x1xf32> to vector<16x128xf32>
    %8 = arith.subf %0, %7 : vector<16x128xf32>
    %9 = arith.mulf %8, %8 : vector<16x128xf32>
    %cst_6 = arith.constant dense<0.000000e+00> : vector<16xf32>
    %10 = vector.multi_reduction <add>, %9, %cst_6 [1] : vector<16x128xf32> to vector<16xf32>
    %11 = vector.shape_cast %10 : vector<16xf32> to vector<16x1xf32>
    %cst_7 = arith.constant 1.280000e+02 : f32
    %12 = vector.broadcast %cst_7 : f32 to vector<16x1xf32>
    %13 = arith.divf %11, %12 : vector<16x1xf32>
    %14 = vector.broadcast %6 : vector<16x1xf32> to vector<16x128xf32>
    %15 = arith.subf %0, %14 : vector<16x128xf32>
    %cst_8 = arith.constant 9.99999974E-6 : f32
    %16 = vector.broadcast %cst_8 : f32 to vector<16x1xf32>
    %17 = arith.addf %13, %16 : vector<16x1xf32>
    %18 = math.rsqrt %17 : vector<16x1xf32>
    %19 = vector.broadcast %18 : vector<16x1xf32> to vector<16x128xf32>
    %20 = arith.mulf %15, %19 : vector<16x128xf32>
    %21 = vector.broadcast %1 : vector<1x128xf32> to vector<16x128xf32>
    %22 = arith.mulf %20, %21 : vector<16x128xf32>
    %23 = vector.broadcast %2 : vector<1x128xf32> to vector<16x128xf32>
    %24 = arith.addf %22, %23 : vector<16x128xf32>
    %25 = arith.truncf %24 : vector<16x128xf32> to vector<16x128xbf16>
    %c0_9 = arith.constant 0 : index
    %c0_10 = arith.constant 0 : index
    %26 = vector.load %arg4[%c0_9, %c0_10] : memref<128x512xbf16, #tpu.memory_space<vmem>>, vector<128x512xbf16>
    %cst_11 = arith.constant dense<0.000000e+00> : vector<16x512xf32>
    %27 = tpu.matmul %25, %26, %cst_11 {dimension_numbers = #tpu.dot_dimension_numbers<[1], [0], [0], [1], [0, 0, 1, 1], [], []>} : vector<16x128xbf16>, vector<128x512xbf16>, vector<16x512xf32> -> vector<16x512xf32>
    %c0_12 = arith.constant 0 : index
    %c0_13 = arith.constant 0 : index
    %28 = vector.load %arg5[%c0_12, %c0_13] : memref<1x512xf32, #tpu.memory_space<vmem>>, vector<1x512xf32>
    %29 = vector.broadcast %28 : vector<1x512xf32> to vector<16x512xf32>
    %30 = arith.addf %27, %29 : vector<16x512xf32>
    %cst_14 = arith.constant 5.000000e-01 : f32
    %31 = vector.broadcast %cst_14 : f32 to vector<16x512xf32>
    %32 = arith.mulf %31, %30 : vector<16x512xf32>
    %cst_15 = arith.constant 4.471500e-02 : f32
    %33 = vector.broadcast %cst_15 : f32 to vector<16x512xf32>
    %34 = arith.mulf %33, %30 : vector<16x512xf32>
    %35 = arith.mulf %34, %30 : vector<16x512xf32>
    %36 = arith.mulf %35, %30 : vector<16x512xf32>
    %37 = arith.addf %30, %36 : vector<16x512xf32>
    %cst_16 = arith.constant 0.797884583 : f32
    %38 = vector.broadcast %cst_16 : f32 to vector<16x512xf32>
    %39 = arith.mulf %38, %37 : vector<16x512xf32>
    %40 = math.tanh %39 : vector<16x512xf32>
    %cst_17 = arith.constant 1.000000e+00 : f32
    %41 = vector.broadcast %cst_17 : f32 to vector<16x512xf32>
    %42 = arith.addf %41, %40 : vector<16x512xf32>
    %43 = arith.mulf %32, %42 : vector<16x512xf32>
    %44 = arith.truncf %43 : vector<16x512xf32> to vector<16x512xbf16>
    %c0_18 = arith.constant 0 : index
    %c0_19 = arith.constant 0 : index
    %45 = vector.load %arg6[%c0_18, %c0_19] : memref<512x128xbf16, #tpu.memory_space<vmem>>, vector<512x128xbf16>
    %cst_20 = arith.constant dense<0.000000e+00> : vector<16x128xf32>
    %46 = tpu.matmul %44, %45, %cst_20 {dimension_numbers = #tpu.dot_dimension_numbers<[1], [0], [0], [1], [0, 0, 1, 1], [], []>} : vector<16x512xbf16>, vector<512x128xbf16>, vector<16x128xf32> -> vector<16x128xf32>
    %c0_21 = arith.constant 0 : index
    %c0_22 = arith.constant 0 : index
    %47 = vector.load %arg7[%c0_21, %c0_22] : memref<1x128xf32, #tpu.memory_space<vmem>>, vector<1x128xf32>
    %48 = vector.broadcast %47 : vector<1x128xf32> to vector<16x128xf32>
    %49 = arith.addf %46, %48 : vector<16x128xf32>
    %50 = arith.addf %0, %49 : vector<16x128xf32>
    %c0_23 = arith.constant 0 : index
    %c0_24 = arith.constant 0 : index
    %51 = vector.load %arg8[%c0_23, %c0_24] : memref<16x128xf32, #tpu.memory_space<vmem>>, vector<16x128xf32>
    tpu.vector_store %arg8[%c0_23, %c0_24], %50 {strides = array<i32>} : memref<16x128xf32, #tpu.memory_space<vmem>>, vector<16x128xf32>,
    return
  }
  func.func @transform_0(%arg0: i32) -> (i32, i32) {
    %c0_i32 = arith.constant 0 : i32
    %c0_i32_0 = arith.constant 0 : i32
    return %arg0, %c0_i32 : i32, i32
  }
  func.func @transform_1(%arg0: i32) -> (i32, i32) {
    %c0_i32 = arith.constant 0 : i32
    %c0_i32_0 = arith.constant 0 : i32
    %c0_i32_1 = arith.constant 0 : i32
    return %c0_i32, %c0_i32_0 : i32, i32
  }
  func.func @transform_2(%arg0: i32) -> (i32, i32) {
    %c0_i32 = arith.constant 0 : i32
    %c0_i32_0 = arith.constant 0 : i32
    %c0_i32_1 = arith.constant 0 : i32
    return %c0_i32, %c0_i32_0 : i32, i32
  }
  func.func @transform_3(%arg0: i32) -> (i32, i32) {
    %c0_i32 = arith.constant 0 : i32
    %c0_i32_0 = arith.constant 0 : i32
    %c0_i32_1 = arith.constant 0 : i32
    return %c0_i32, %c0_i32_0 : i32, i32
  }
  func.func @transform_4(%arg0: i32) -> (i32, i32) {
    %c0_i32 = arith.constant 0 : i32
    %c0_i32_0 = arith.constant 0 : i32
    %c0_i32_1 = arith.constant 0 : i32
    return %c0_i32, %c0_i32_0 : i32, i32
  }
  func.func @transform_5(%arg0: i32) -> (i32, i32) {
    %c0_i32 = arith.constant 0 : i32
    %c0_i32_0 = arith.constant 0 : i32
    %c0_i32_1 = arith.constant 0 : i32
    return %c0_i32, %c0_i32_0 : i32, i32
  }
  func.func @transform_6(%arg0: i32) -> (i32, i32) {
    %c0_i32 = arith.constant 0 : i32
    %c0_i32_0 = arith.constant 0 : i32
    %c0_i32_1 = arith.constant 0 : i32
    return %c0_i32, %c0_i32_0 : i32, i32
  }
  func.func @transform_7(%arg0: i32) -> (i32, i32) {
    %c0_i32 = arith.constant 0 : i32
    %c0_i32_0 = arith.constant 0 : i32
    return %arg0, %c0_i32 : i32, i32
  }
}

module attributes {stable_mosaic.version = 11 : i64} {
  func.func @attn_branch_kernel(%arg0: i32, %arg1: memref<1x8x128xf32, #tpu.memory_space<vmem>>, %arg2: memref<1x128xf32, #tpu.memory_space<vmem>>, %arg3: memref<1x128xf32, #tpu.memory_space<vmem>>, %arg4: memref<128x384xbf16, #tpu.memory_space<vmem>>, %arg5: memref<1x384xf32, #tpu.memory_space<vmem>>, %arg6: memref<128x128xbf16, #tpu.memory_space<vmem>>, %arg7: memref<1x128xf32, #tpu.memory_space<vmem>>, %arg8: memref<1x8x128xf32, #tpu.memory_space<vmem>>) attributes {dimension_semantics = [#tpu.dimension_semantics<parallel>], iteration_bounds = array<i64: 2>, scalar_prefetch = 0 : i64, scratch_operands = 0 : i64, tpu.core_type = #tpu.core_type<tc>, window_params = [{transform_indices = @transform_0, window_bounds = array<i64: 1, 8, 128>}, {pipeline_mode = #tpu.pipeline_mode<synchronous>, transform_indices = @transform_1, window_bounds = array<i64: 1, 128>}, {pipeline_mode = #tpu.pipeline_mode<synchronous>, transform_indices = @transform_2, window_bounds = array<i64: 1, 128>}, {pipeline_mode = #tpu.pipeline_mode<synchronous>, transform_indices = @transform_3, window_bounds = array<i64: 128, 384>}, {pipeline_mode = #tpu.pipeline_mode<synchronous>, transform_indices = @transform_4, window_bounds = array<i64: 1, 384>}, {pipeline_mode = #tpu.pipeline_mode<synchronous>, transform_indices = @transform_5, window_bounds = array<i64: 128, 128>}, {pipeline_mode = #tpu.pipeline_mode<synchronous>, transform_indices = @transform_6, window_bounds = array<i64: 1, 128>}, {transform_indices = @transform_7, window_bounds = array<i64: 1, 8, 128>}]} {
    %c0 = arith.constant 0 : index
    %c0_0 = arith.constant 0 : index
    %c0_1 = arith.constant 0 : index
    %0 = vector.load %arg1[%c0, %c0_0, %c0_1] : memref<1x8x128xf32, #tpu.memory_space<vmem>>, vector<1x8x128xf32>
    %1 = vector.shape_cast %0 : vector<1x8x128xf32> to vector<8x128xf32>
    %c0_2 = arith.constant 0 : index
    %c0_3 = arith.constant 0 : index
    %2 = vector.load %arg2[%c0_2, %c0_3] : memref<1x128xf32, #tpu.memory_space<vmem>>, vector<1x128xf32>
    %c0_4 = arith.constant 0 : index
    %c0_5 = arith.constant 0 : index
    %3 = vector.load %arg3[%c0_4, %c0_5] : memref<1x128xf32, #tpu.memory_space<vmem>>, vector<1x128xf32>
    %cst = arith.constant dense<0.000000e+00> : vector<8xf32>
    %4 = vector.multi_reduction <add>, %1, %cst [1] : vector<8x128xf32> to vector<8xf32>
    %5 = vector.shape_cast %4 : vector<8xf32> to vector<8x1xf32>
    %cst_6 = arith.constant 1.280000e+02 : f32
    %6 = vector.broadcast %cst_6 : f32 to vector<8x1xf32>
    %7 = arith.divf %5, %6 : vector<8x1xf32>
    %8 = vector.broadcast %7 : vector<8x1xf32> to vector<8x128xf32>
    %9 = arith.subf %1, %8 : vector<8x128xf32>
    %10 = arith.mulf %9, %9 : vector<8x128xf32>
    %cst_7 = arith.constant dense<0.000000e+00> : vector<8xf32>
    %11 = vector.multi_reduction <add>, %10, %cst_7 [1] : vector<8x128xf32> to vector<8xf32>
    %12 = vector.shape_cast %11 : vector<8xf32> to vector<8x1xf32>
    %cst_8 = arith.constant 1.280000e+02 : f32
    %13 = vector.broadcast %cst_8 : f32 to vector<8x1xf32>
    %14 = arith.divf %12, %13 : vector<8x1xf32>
    %15 = vector.broadcast %7 : vector<8x1xf32> to vector<8x128xf32>
    %16 = arith.subf %1, %15 : vector<8x128xf32>
    %cst_9 = arith.constant 9.99999974E-6 : f32
    %17 = vector.broadcast %cst_9 : f32 to vector<8x1xf32>
    %18 = arith.addf %14, %17 : vector<8x1xf32>
    %19 = math.rsqrt %18 : vector<8x1xf32>
    %20 = vector.broadcast %19 : vector<8x1xf32> to vector<8x128xf32>
    %21 = arith.mulf %16, %20 : vector<8x128xf32>
    %22 = vector.broadcast %2 : vector<1x128xf32> to vector<8x128xf32>
    %23 = arith.mulf %21, %22 : vector<8x128xf32>
    %24 = vector.broadcast %3 : vector<1x128xf32> to vector<8x128xf32>
    %25 = arith.addf %23, %24 : vector<8x128xf32>
    %26 = arith.truncf %25 : vector<8x128xf32> to vector<8x128xbf16>
    %c0_10 = arith.constant 0 : index
    %c0_11 = arith.constant 0 : index
    %27 = vector.load %arg4[%c0_10, %c0_11] : memref<128x384xbf16, #tpu.memory_space<vmem>>, vector<128x384xbf16>
    %cst_12 = arith.constant dense<0.000000e+00> : vector<8x384xf32>
    %28 = tpu.matmul %26, %27, %cst_12 {dimension_numbers = #tpu.dot_dimension_numbers<[1], [0], [0], [1], [0, 0, 1, 1], [], []>} : vector<8x128xbf16>, vector<128x384xbf16>, vector<8x384xf32> -> vector<8x384xf32>
    %c0_13 = arith.constant 0 : index
    %c0_14 = arith.constant 0 : index
    %29 = vector.load %arg5[%c0_13, %c0_14] : memref<1x384xf32, #tpu.memory_space<vmem>>, vector<1x384xf32>
    %30 = vector.broadcast %29 : vector<1x384xf32> to vector<8x384xf32>
    %31 = arith.addf %28, %30 : vector<8x384xf32>
    %32 = arith.truncf %31 : vector<8x384xf32> to vector<8x384xbf16>
    %33 = tpu.iota {dimensions = array<i32: 0>} : vector<8x8xi32>
    %34 = tpu.iota {dimensions = array<i32: 1>} : vector<8x8xi32>
    %35 = arith.cmpi sle, %34, %33 : vector<8x8xi32>
    %36 = vector.extract_strided_slice %32 {offsets = [0, 0], sizes = [8, 32], strides = [1, 1]} : vector<8x384xbf16> to vector<8x32xbf16>
    %37 = vector.extract_strided_slice %32 {offsets = [0, 128], sizes = [8, 32], strides = [1, 1]} : vector<8x384xbf16> to vector<8x32xbf16>
    %38 = vector.extract_strided_slice %32 {offsets = [0, 256], sizes = [8, 32], strides = [1, 1]} : vector<8x384xbf16> to vector<8x32xbf16>
    %cst_15 = arith.constant dense<0.000000e+00> : vector<8x8xf32>
    %39 = tpu.matmul %36, %37, %cst_15 {dimension_numbers = #tpu.dot_dimension_numbers<[1], [1], [0], [0], [0, 0, 1, 0], [], []>} : vector<8x32xbf16>, vector<8x32xbf16>, vector<8x8xf32> -> vector<8x8xf32>
    %cst_16 = arith.constant 0.176776692 : f32
    %40 = vector.broadcast %cst_16 : f32 to vector<8x8xf32>
    %41 = arith.mulf %39, %40 : vector<8x8xf32>
    %cst_17 = arith.constant -1.000000e+30 : f32
    %42 = vector.broadcast %cst_17 : f32 to vector<8x8xf32>
    %43 = arith.select %35, %41, %42 : vector<8x8xi1>, vector<8x8xf32>
    %cst_18 = arith.constant dense<0xFF800000> : vector<8xf32>
    %44 = vector.multi_reduction <maximumf>, %43, %cst_18 [1] : vector<8x8xf32> to vector<8xf32>
    %45 = vector.shape_cast %44 : vector<8xf32> to vector<8x1xf32>
    %46 = vector.broadcast %45 : vector<8x1xf32> to vector<8x8xf32>
    %47 = arith.subf %43, %46 : vector<8x8xf32>
    %48 = math.exp %47 : vector<8x8xf32>
    %cst_19 = arith.constant dense<0.000000e+00> : vector<8xf32>
    %49 = vector.multi_reduction <add>, %48, %cst_19 [1] : vector<8x8xf32> to vector<8xf32>
    %50 = vector.shape_cast %49 : vector<8xf32> to vector<8x1xf32>
    %51 = tpu.reciprocal %50 {approx = true} : vector<8x1xf32> -> vector<8x1xf32>
    %52 = vector.broadcast %51 : vector<8x1xf32> to vector<8x8xf32>
    %53 = arith.mulf %48, %52 : vector<8x8xf32>
    %54 = arith.truncf %53 : vector<8x8xf32> to vector<8x8xbf16>
    %cst_20 = arith.constant dense<0.000000e+00> : vector<8x32xf32>
    %55 = tpu.matmul %54, %38, %cst_20 {dimension_numbers = #tpu.dot_dimension_numbers<[1], [0], [0], [1], [0, 0, 1, 1], [], []>} : vector<8x8xbf16>, vector<8x32xbf16>, vector<8x32xf32> -> vector<8x32xf32>
    %56 = vector.extract_strided_slice %32 {offsets = [0, 32], sizes = [8, 32], strides = [1, 1]} : vector<8x384xbf16> to vector<8x32xbf16>
    %57 = vector.extract_strided_slice %32 {offsets = [0, 160], sizes = [8, 32], strides = [1, 1]} : vector<8x384xbf16> to vector<8x32xbf16>
    %58 = vector.extract_strided_slice %32 {offsets = [0, 288], sizes = [8, 32], strides = [1, 1]} : vector<8x384xbf16> to vector<8x32xbf16>
    %cst_21 = arith.constant dense<0.000000e+00> : vector<8x8xf32>
    %59 = tpu.matmul %56, %57, %cst_21 {dimension_numbers = #tpu.dot_dimension_numbers<[1], [1], [0], [0], [0, 0, 1, 0], [], []>} : vector<8x32xbf16>, vector<8x32xbf16>, vector<8x8xf32> -> vector<8x8xf32>
    %cst_22 = arith.constant 0.176776692 : f32
    %60 = vector.broadcast %cst_22 : f32 to vector<8x8xf32>
    %61 = arith.mulf %59, %60 : vector<8x8xf32>
    %cst_23 = arith.constant -1.000000e+30 : f32
    %62 = vector.broadcast %cst_23 : f32 to vector<8x8xf32>
    %63 = arith.select %35, %61, %62 : vector<8x8xi1>, vector<8x8xf32>
    %cst_24 = arith.constant dense<0xFF800000> : vector<8xf32>
    %64 = vector.multi_reduction <maximumf>, %63, %cst_24 [1] : vector<8x8xf32> to vector<8xf32>
    %65 = vector.shape_cast %64 : vector<8xf32> to vector<8x1xf32>
    %66 = vector.broadcast %65 : vector<8x1xf32> to vector<8x8xf32>
    %67 = arith.subf %63, %66 : vector<8x8xf32>
    %68 = math.exp %67 : vector<8x8xf32>
    %cst_25 = arith.constant dense<0.000000e+00> : vector<8xf32>
    %69 = vector.multi_reduction <add>, %68, %cst_25 [1] : vector<8x8xf32> to vector<8xf32>
    %70 = vector.shape_cast %69 : vector<8xf32> to vector<8x1xf32>
    %71 = tpu.reciprocal %70 {approx = true} : vector<8x1xf32> -> vector<8x1xf32>
    %72 = vector.broadcast %71 : vector<8x1xf32> to vector<8x8xf32>
    %73 = arith.mulf %68, %72 : vector<8x8xf32>
    %74 = arith.truncf %73 : vector<8x8xf32> to vector<8x8xbf16>
    %cst_26 = arith.constant dense<0.000000e+00> : vector<8x32xf32>
    %75 = tpu.matmul %74, %58, %cst_26 {dimension_numbers = #tpu.dot_dimension_numbers<[1], [0], [0], [1], [0, 0, 1, 1], [], []>} : vector<8x8xbf16>, vector<8x32xbf16>, vector<8x32xf32> -> vector<8x32xf32>
    %76 = vector.extract_strided_slice %32 {offsets = [0, 64], sizes = [8, 32], strides = [1, 1]} : vector<8x384xbf16> to vector<8x32xbf16>
    %77 = vector.extract_strided_slice %32 {offsets = [0, 192], sizes = [8, 32], strides = [1, 1]} : vector<8x384xbf16> to vector<8x32xbf16>
    %78 = vector.extract_strided_slice %32 {offsets = [0, 320], sizes = [8, 32], strides = [1, 1]} : vector<8x384xbf16> to vector<8x32xbf16>
    %cst_27 = arith.constant dense<0.000000e+00> : vector<8x8xf32>
    %79 = tpu.matmul %76, %77, %cst_27 {dimension_numbers = #tpu.dot_dimension_numbers<[1], [1], [0], [0], [0, 0, 1, 0], [], []>} : vector<8x32xbf16>, vector<8x32xbf16>, vector<8x8xf32> -> vector<8x8xf32>
    %cst_28 = arith.constant 0.176776692 : f32
    %80 = vector.broadcast %cst_28 : f32 to vector<8x8xf32>
    %81 = arith.mulf %79, %80 : vector<8x8xf32>
    %cst_29 = arith.constant -1.000000e+30 : f32
    %82 = vector.broadcast %cst_29 : f32 to vector<8x8xf32>
    %83 = arith.select %35, %81, %82 : vector<8x8xi1>, vector<8x8xf32>
    %cst_30 = arith.constant dense<0xFF800000> : vector<8xf32>
    %84 = vector.multi_reduction <maximumf>, %83, %cst_30 [1] : vector<8x8xf32> to vector<8xf32>
    %85 = vector.shape_cast %84 : vector<8xf32> to vector<8x1xf32>
    %86 = vector.broadcast %85 : vector<8x1xf32> to vector<8x8xf32>
    %87 = arith.subf %83, %86 : vector<8x8xf32>
    %88 = math.exp %87 : vector<8x8xf32>
    %cst_31 = arith.constant dense<0.000000e+00> : vector<8xf32>
    %89 = vector.multi_reduction <add>, %88, %cst_31 [1] : vector<8x8xf32> to vector<8xf32>
    %90 = vector.shape_cast %89 : vector<8xf32> to vector<8x1xf32>
    %91 = tpu.reciprocal %90 {approx = true} : vector<8x1xf32> -> vector<8x1xf32>
    %92 = vector.broadcast %91 : vector<8x1xf32> to vector<8x8xf32>
    %93 = arith.mulf %88, %92 : vector<8x8xf32>
    %94 = arith.truncf %93 : vector<8x8xf32> to vector<8x8xbf16>
    %cst_32 = arith.constant dense<0.000000e+00> : vector<8x32xf32>
    %95 = tpu.matmul %94, %78, %cst_32 {dimension_numbers = #tpu.dot_dimension_numbers<[1], [0], [0], [1], [0, 0, 1, 1], [], []>} : vector<8x8xbf16>, vector<8x32xbf16>, vector<8x32xf32> -> vector<8x32xf32>
    %96 = vector.extract_strided_slice %32 {offsets = [0, 96], sizes = [8, 32], strides = [1, 1]} : vector<8x384xbf16> to vector<8x32xbf16>
    %97 = vector.extract_strided_slice %32 {offsets = [0, 224], sizes = [8, 32], strides = [1, 1]} : vector<8x384xbf16> to vector<8x32xbf16>
    %98 = vector.extract_strided_slice %32 {offsets = [0, 352], sizes = [8, 32], strides = [1, 1]} : vector<8x384xbf16> to vector<8x32xbf16>
    %cst_33 = arith.constant dense<0.000000e+00> : vector<8x8xf32>
    %99 = tpu.matmul %96, %97, %cst_33 {dimension_numbers = #tpu.dot_dimension_numbers<[1], [1], [0], [0], [0, 0, 1, 0], [], []>} : vector<8x32xbf16>, vector<8x32xbf16>, vector<8x8xf32> -> vector<8x8xf32>
    %cst_34 = arith.constant 0.176776692 : f32
    %100 = vector.broadcast %cst_34 : f32 to vector<8x8xf32>
    %101 = arith.mulf %99, %100 : vector<8x8xf32>
    %cst_35 = arith.constant -1.000000e+30 : f32
    %102 = vector.broadcast %cst_35 : f32 to vector<8x8xf32>
    %103 = arith.select %35, %101, %102 : vector<8x8xi1>, vector<8x8xf32>
    %cst_36 = arith.constant dense<0xFF800000> : vector<8xf32>
    %104 = vector.multi_reduction <maximumf>, %103, %cst_36 [1] : vector<8x8xf32> to vector<8xf32>
    %105 = vector.shape_cast %104 : vector<8xf32> to vector<8x1xf32>
    %106 = vector.broadcast %105 : vector<8x1xf32> to vector<8x8xf32>
    %107 = arith.subf %103, %106 : vector<8x8xf32>
    %108 = math.exp %107 : vector<8x8xf32>
    %cst_37 = arith.constant dense<0.000000e+00> : vector<8xf32>
    %109 = vector.multi_reduction <add>, %108, %cst_37 [1] : vector<8x8xf32> to vector<8xf32>
    %110 = vector.shape_cast %109 : vector<8xf32> to vector<8x1xf32>
    %111 = tpu.reciprocal %110 {approx = true} : vector<8x1xf32> -> vector<8x1xf32>
    %112 = vector.broadcast %111 : vector<8x1xf32> to vector<8x8xf32>
    %113 = arith.mulf %108, %112 : vector<8x8xf32>
    %114 = arith.truncf %113 : vector<8x8xf32> to vector<8x8xbf16>
    %cst_38 = arith.constant dense<0.000000e+00> : vector<8x32xf32>
    %115 = tpu.matmul %114, %98, %cst_38 {dimension_numbers = #tpu.dot_dimension_numbers<[1], [0], [0], [1], [0, 0, 1, 1], [], []>} : vector<8x8xbf16>, vector<8x32xbf16>, vector<8x32xf32> -> vector<8x32xf32>
    %116 = tpu.concatenate %55, %75, %95, %115 in 1 : vector<8x32xf32>, vector<8x32xf32>, vector<8x32xf32>, vector<8x32xf32> -> vector<8x128xf32>
    %117 = arith.truncf %116 : vector<8x128xf32> to vector<8x128xbf16>
    %c0_39 = arith.constant 0 : index
    %c0_40 = arith.constant 0 : index
    %118 = vector.load %arg6[%c0_39, %c0_40] : memref<128x128xbf16, #tpu.memory_space<vmem>>, vector<128x128xbf16>
    %cst_41 = arith.constant dense<0.000000e+00> : vector<8x128xf32>
    %119 = tpu.matmul %117, %118, %cst_41 {dimension_numbers = #tpu.dot_dimension_numbers<[1], [0], [0], [1], [0, 0, 1, 1], [], []>} : vector<8x128xbf16>, vector<128x128xbf16>, vector<8x128xf32> -> vector<8x128xf32>
    %120 = arith.addf %1, %119 : vector<8x128xf32>
    %c0_42 = arith.constant 0 : index
    %c0_43 = arith.constant 0 : index
    %121 = vector.load %arg7[%c0_42, %c0_43] : memref<1x128xf32, #tpu.memory_space<vmem>>, vector<1x128xf32>
    %122 = vector.broadcast %121 : vector<1x128xf32> to vector<8x128xf32>
    %123 = arith.addf %120, %122 : vector<8x128xf32>
    %c0_44 = arith.constant 0 : index
    %c0_45 = arith.constant 0 : index
    %c0_46 = arith.constant 0 : index
    %124 = vector.load %arg8[%c0_44, %c0_45, %c0_46] : memref<1x8x128xf32, #tpu.memory_space<vmem>>, vector<1x8x128xf32>
    %125 = vector.shape_cast %124 : vector<1x8x128xf32> to vector<8x128xf32>
    %126 = vector.shape_cast %123 : vector<8x128xf32> to vector<1x8x128xf32>
    tpu.vector_store %arg8[%c0_44, %c0_45, %c0_46], %126 {strides = array<i32>} : memref<1x8x128xf32, #tpu.memory_space<vmem>>, vector<1x8x128xf32>,
    return
  }
  func.func @transform_0(%arg0: i32) -> (i32, i32, i32) {
    %c0_i32 = arith.constant 0 : i32
    %c0_i32_0 = arith.constant 0 : i32
    %c0_i32_1 = arith.constant 0 : i32
    return %arg0, %c0_i32, %c0_i32_0 : i32, i32, i32
  }
  func.func @transform_1(%arg0: i32) -> (i32, i32) {
    %c0_i32 = arith.constant 0 : i32
    %c0_i32_0 = arith.constant 0 : i32
    %c0_i32_1 = arith.constant 0 : i32
    return %c0_i32, %c0_i32_0 : i32, i32
  }
  func.func @transform_2(%arg0: i32) -> (i32, i32) {
    %c0_i32 = arith.constant 0 : i32
    %c0_i32_0 = arith.constant 0 : i32
    %c0_i32_1 = arith.constant 0 : i32
    return %c0_i32, %c0_i32_0 : i32, i32
  }
  func.func @transform_3(%arg0: i32) -> (i32, i32) {
    %c0_i32 = arith.constant 0 : i32
    %c0_i32_0 = arith.constant 0 : i32
    %c0_i32_1 = arith.constant 0 : i32
    return %c0_i32, %c0_i32_0 : i32, i32
  }
  func.func @transform_4(%arg0: i32) -> (i32, i32) {
    %c0_i32 = arith.constant 0 : i32
    %c0_i32_0 = arith.constant 0 : i32
    %c0_i32_1 = arith.constant 0 : i32
    return %c0_i32, %c0_i32_0 : i32, i32
  }
  func.func @transform_5(%arg0: i32) -> (i32, i32) {
    %c0_i32 = arith.constant 0 : i32
    %c0_i32_0 = arith.constant 0 : i32
    %c0_i32_1 = arith.constant 0 : i32
    return %c0_i32, %c0_i32_0 : i32, i32
  }
  func.func @transform_6(%arg0: i32) -> (i32, i32) {
    %c0_i32 = arith.constant 0 : i32
    %c0_i32_0 = arith.constant 0 : i32
    %c0_i32_1 = arith.constant 0 : i32
    return %c0_i32, %c0_i32_0 : i32, i32
  }
  func.func @transform_7(%arg0: i32) -> (i32, i32, i32) {
    %c0_i32 = arith.constant 0 : i32
    %c0_i32_0 = arith.constant 0 : i32
    %c0_i32_1 = arith.constant 0 : i32
    return %arg0, %c0_i32, %c0_i32_0 : i32, i32, i32
  }
}

module attributes {stable_mosaic.version = 11 : i64} {
  func.func @ln_lmhead_kernel(%arg0: i32, %arg1: i32, %arg2: memref<16x128xf32, #tpu.memory_space<vmem>>, %arg3: memref<1x128xf32, #tpu.memory_space<vmem>>, %arg4: memref<1x128xf32, #tpu.memory_space<vmem>>, %arg5: memref<256x128xbf16, #tpu.memory_space<vmem>>, %arg6: memref<16x256xf32, #tpu.memory_space<vmem>>) attributes {dimension_semantics = [#tpu.dimension_semantics<parallel>, #tpu.dimension_semantics<parallel>], iteration_bounds = array<i64: 1, 1>, scalar_prefetch = 0 : i64, scratch_operands = 0 : i64, tpu.core_type = #tpu.core_type<tc>, window_params = [{transform_indices = @transform_0, window_bounds = array<i64: 16, 128>}, {pipeline_mode = #tpu.pipeline_mode<synchronous>, transform_indices = @transform_1, window_bounds = array<i64: 1, 128>}, {pipeline_mode = #tpu.pipeline_mode<synchronous>, transform_indices = @transform_2, window_bounds = array<i64: 1, 128>}, {transform_indices = @transform_3, window_bounds = array<i64: 256, 128>}, {transform_indices = @transform_4, window_bounds = array<i64: 16, 256>}]} {
    %c0 = arith.constant 0 : index
    %c0_0 = arith.constant 0 : index
    %0 = vector.load %arg2[%c0, %c0_0] : memref<16x128xf32, #tpu.memory_space<vmem>>, vector<16x128xf32>
    %c0_1 = arith.constant 0 : index
    %c0_2 = arith.constant 0 : index
    %1 = vector.load %arg3[%c0_1, %c0_2] : memref<1x128xf32, #tpu.memory_space<vmem>>, vector<1x128xf32>
    %c0_3 = arith.constant 0 : index
    %c0_4 = arith.constant 0 : index
    %2 = vector.load %arg4[%c0_3, %c0_4] : memref<1x128xf32, #tpu.memory_space<vmem>>, vector<1x128xf32>
    %cst = arith.constant dense<0.000000e+00> : vector<16xf32>
    %3 = vector.multi_reduction <add>, %0, %cst [1] : vector<16x128xf32> to vector<16xf32>
    %4 = vector.shape_cast %3 : vector<16xf32> to vector<16x1xf32>
    %cst_5 = arith.constant 1.280000e+02 : f32
    %5 = vector.broadcast %cst_5 : f32 to vector<16x1xf32>
    %6 = arith.divf %4, %5 : vector<16x1xf32>
    %7 = vector.broadcast %6 : vector<16x1xf32> to vector<16x128xf32>
    %8 = arith.subf %0, %7 : vector<16x128xf32>
    %9 = arith.mulf %8, %8 : vector<16x128xf32>
    %cst_6 = arith.constant dense<0.000000e+00> : vector<16xf32>
    %10 = vector.multi_reduction <add>, %9, %cst_6 [1] : vector<16x128xf32> to vector<16xf32>
    %11 = vector.shape_cast %10 : vector<16xf32> to vector<16x1xf32>
    %cst_7 = arith.constant 1.280000e+02 : f32
    %12 = vector.broadcast %cst_7 : f32 to vector<16x1xf32>
    %13 = arith.divf %11, %12 : vector<16x1xf32>
    %14 = vector.broadcast %6 : vector<16x1xf32> to vector<16x128xf32>
    %15 = arith.subf %0, %14 : vector<16x128xf32>
    %cst_8 = arith.constant 9.99999974E-6 : f32
    %16 = vector.broadcast %cst_8 : f32 to vector<16x1xf32>
    %17 = arith.addf %13, %16 : vector<16x1xf32>
    %18 = math.rsqrt %17 : vector<16x1xf32>
    %19 = vector.broadcast %18 : vector<16x1xf32> to vector<16x128xf32>
    %20 = arith.mulf %15, %19 : vector<16x128xf32>
    %21 = vector.broadcast %1 : vector<1x128xf32> to vector<16x128xf32>
    %22 = arith.mulf %20, %21 : vector<16x128xf32>
    %23 = vector.broadcast %2 : vector<1x128xf32> to vector<16x128xf32>
    %24 = arith.addf %22, %23 : vector<16x128xf32>
    %25 = arith.truncf %24 : vector<16x128xf32> to vector<16x128xbf16>
    %c0_9 = arith.constant 0 : index
    %c0_10 = arith.constant 0 : index
    %26 = vector.load %arg5[%c0_9, %c0_10] : memref<256x128xbf16, #tpu.memory_space<vmem>>, vector<256x128xbf16>
    %cst_11 = arith.constant dense<0.000000e+00> : vector<16x256xf32>
    %27 = tpu.matmul %25, %26, %cst_11 {dimension_numbers = #tpu.dot_dimension_numbers<[1], [1], [0], [0], [0, 0, 1, 0], [], []>} : vector<16x128xbf16>, vector<256x128xbf16>, vector<16x256xf32> -> vector<16x256xf32>
    %c0_12 = arith.constant 0 : index
    %c0_13 = arith.constant 0 : index
    %28 = vector.load %arg6[%c0_12, %c0_13] : memref<16x256xf32, #tpu.memory_space<vmem>>, vector<16x256xf32>
    tpu.vector_store %arg6[%c0_12, %c0_13], %27 {strides = array<i32>} : memref<16x256xf32, #tpu.memory_space<vmem>>, vector<16x256xf32>,
    return
  }
  func.func @transform_0(%arg0: i32, %arg1: i32) -> (i32, i32) {
    %c0_i32 = arith.constant 0 : i32
    %c0_i32_0 = arith.constant 0 : i32
    return %arg0, %c0_i32 : i32, i32
  }
  func.func @transform_1(%arg0: i32, %arg1: i32) -> (i32, i32) {
    %c0_i32 = arith.constant 0 : i32
    %c0_i32_0 = arith.constant 0 : i32
    %c0_i32_1 = arith.constant 0 : i32
    return %c0_i32, %c0_i32_0 : i32, i32
  }
  func.func @transform_2(%arg0: i32, %arg1: i32) -> (i32, i32) {
    %c0_i32 = arith.constant 0 : i32
    %c0_i32_0 = arith.constant 0 : i32
    %c0_i32_1 = arith.constant 0 : i32
    return %c0_i32, %c0_i32_0 : i32, i32
  }
  func.func @transform_3(%arg0: i32, %arg1: i32) -> (i32, i32) {
    %c0_i32 = arith.constant 0 : i32
    %c0_i32_0 = arith.constant 0 : i32
    return %arg1, %c0_i32 : i32, i32
  }
  func.func @transform_4(%arg0: i32, %arg1: i32) -> (i32, i32) {
    %c0_i32 = arith.constant 0 : i32
    return %arg0, %arg1 : i32, i32
  }
}

module attributes {stable_mosaic.version = 11 : i64} {
  func.func @attn_branch_kernel(%arg0: i32, %arg1: memref<1x8x128xf32, #tpu.memory_space<vmem>>, %arg2: memref<1x128xf32, #tpu.memory_space<vmem>>, %arg3: memref<1x128xf32, #tpu.memory_space<vmem>>, %arg4: memref<128x384xbf16, #tpu.memory_space<vmem>>, %arg5: memref<1x384xf32, #tpu.memory_space<vmem>>, %arg6: memref<128x128xbf16, #tpu.memory_space<vmem>>, %arg7: memref<1x128xf32, #tpu.memory_space<vmem>>, %arg8: memref<1x8x128xf32, #tpu.memory_space<vmem>>) attributes {dimension_semantics = [#tpu.dimension_semantics<parallel>], iteration_bounds = array<i64: 2>, scalar_prefetch = 0 : i64, scratch_operands = 0 : i64, tpu.core_type = #tpu.core_type<tc>, window_params = [{transform_indices = @transform_0, window_bounds = array<i64: 1, 8, 128>}, {pipeline_mode = #tpu.pipeline_mode<synchronous>, transform_indices = @transform_1, window_bounds = array<i64: 1, 128>}, {pipeline_mode = #tpu.pipeline_mode<synchronous>, transform_indices = @transform_2, window_bounds = array<i64: 1, 128>}, {pipeline_mode = #tpu.pipeline_mode<synchronous>, transform_indices = @transform_3, window_bounds = array<i64: 128, 384>}, {pipeline_mode = #tpu.pipeline_mode<synchronous>, transform_indices = @transform_4, window_bounds = array<i64: 1, 384>}, {pipeline_mode = #tpu.pipeline_mode<synchronous>, transform_indices = @transform_5, window_bounds = array<i64: 128, 128>}, {pipeline_mode = #tpu.pipeline_mode<synchronous>, transform_indices = @transform_6, window_bounds = array<i64: 1, 128>}, {transform_indices = @transform_7, window_bounds = array<i64: 1, 8, 128>}]} {
    %c0 = arith.constant 0 : index
    %c0_0 = arith.constant 0 : index
    %c0_1 = arith.constant 0 : index
    %0 = vector.load %arg1[%c0, %c0_0, %c0_1] : memref<1x8x128xf32, #tpu.memory_space<vmem>>, vector<1x8x128xf32>
    %1 = vector.shape_cast %0 : vector<1x8x128xf32> to vector<8x128xf32>
    %c0_2 = arith.constant 0 : index
    %c0_3 = arith.constant 0 : index
    %2 = vector.load %arg2[%c0_2, %c0_3] : memref<1x128xf32, #tpu.memory_space<vmem>>, vector<1x128xf32>
    %c0_4 = arith.constant 0 : index
    %c0_5 = arith.constant 0 : index
    %3 = vector.load %arg3[%c0_4, %c0_5] : memref<1x128xf32, #tpu.memory_space<vmem>>, vector<1x128xf32>
    %cst = arith.constant dense<0.000000e+00> : vector<8xf32>
    %4 = vector.multi_reduction <add>, %1, %cst [1] : vector<8x128xf32> to vector<8xf32>
    %5 = vector.shape_cast %4 : vector<8xf32> to vector<8x1xf32>
    %cst_6 = arith.constant 1.280000e+02 : f32
    %6 = vector.broadcast %cst_6 : f32 to vector<8x1xf32>
    %7 = arith.divf %5, %6 : vector<8x1xf32>
    %8 = vector.broadcast %7 : vector<8x1xf32> to vector<8x128xf32>
    %9 = arith.subf %1, %8 : vector<8x128xf32>
    %10 = arith.mulf %9, %9 : vector<8x128xf32>
    %cst_7 = arith.constant dense<0.000000e+00> : vector<8xf32>
    %11 = vector.multi_reduction <add>, %10, %cst_7 [1] : vector<8x128xf32> to vector<8xf32>
    %12 = vector.shape_cast %11 : vector<8xf32> to vector<8x1xf32>
    %cst_8 = arith.constant 1.280000e+02 : f32
    %13 = vector.broadcast %cst_8 : f32 to vector<8x1xf32>
    %14 = arith.divf %12, %13 : vector<8x1xf32>
    %15 = vector.broadcast %7 : vector<8x1xf32> to vector<8x128xf32>
    %16 = arith.subf %1, %15 : vector<8x128xf32>
    %cst_9 = arith.constant 9.99999974E-6 : f32
    %17 = vector.broadcast %cst_9 : f32 to vector<8x1xf32>
    %18 = arith.addf %14, %17 : vector<8x1xf32>
    %19 = math.rsqrt %18 : vector<8x1xf32>
    %20 = vector.broadcast %19 : vector<8x1xf32> to vector<8x128xf32>
    %21 = arith.mulf %16, %20 : vector<8x128xf32>
    %22 = vector.broadcast %2 : vector<1x128xf32> to vector<8x128xf32>
    %23 = arith.mulf %21, %22 : vector<8x128xf32>
    %24 = vector.broadcast %3 : vector<1x128xf32> to vector<8x128xf32>
    %25 = arith.addf %23, %24 : vector<8x128xf32>
    %26 = arith.truncf %25 : vector<8x128xf32> to vector<8x128xbf16>
    %c0_10 = arith.constant 0 : index
    %c0_11 = arith.constant 0 : index
    %27 = vector.load %arg4[%c0_10, %c0_11] : memref<128x384xbf16, #tpu.memory_space<vmem>>, vector<128x384xbf16>
    %cst_12 = arith.constant dense<0.000000e+00> : vector<8x384xf32>
    %28 = tpu.matmul %26, %27, %cst_12 {dimension_numbers = #tpu.dot_dimension_numbers<[1], [0], [0], [1], [0, 0, 1, 1], [], []>} : vector<8x128xbf16>, vector<128x384xbf16>, vector<8x384xf32> -> vector<8x384xf32>
    %c0_13 = arith.constant 0 : index
    %c0_14 = arith.constant 0 : index
    %29 = vector.load %arg5[%c0_13, %c0_14] : memref<1x384xf32, #tpu.memory_space<vmem>>, vector<1x384xf32>
    %30 = vector.broadcast %29 : vector<1x384xf32> to vector<8x384xf32>
    %31 = arith.addf %28, %30 : vector<8x384xf32>
    %32 = arith.truncf %31 : vector<8x384xf32> to vector<8x384xbf16>
    %33 = tpu.iota {dimensions = array<i32: 0>} : vector<8x8xi32>
    %34 = tpu.iota {dimensions = array<i32: 1>} : vector<8x8xi32>
    %35 = arith.cmpi sle, %34, %33 : vector<8x8xi32>
    %36 = vector.extract_strided_slice %32 {offsets = [0, 0], sizes = [8, 32], strides = [1, 1]} : vector<8x384xbf16> to vector<8x32xbf16>
    %37 = vector.extract_strided_slice %32 {offsets = [0, 128], sizes = [8, 32], strides = [1, 1]} : vector<8x384xbf16> to vector<8x32xbf16>
    %38 = vector.extract_strided_slice %32 {offsets = [0, 256], sizes = [8, 32], strides = [1, 1]} : vector<8x384xbf16> to vector<8x32xbf16>
    %cst_15 = arith.constant dense<0.000000e+00> : vector<8x8xf32>
    %39 = tpu.matmul %36, %37, %cst_15 {dimension_numbers = #tpu.dot_dimension_numbers<[1], [1], [0], [0], [0, 0, 1, 0], [], []>} : vector<8x32xbf16>, vector<8x32xbf16>, vector<8x8xf32> -> vector<8x8xf32>
    %cst_16 = arith.constant 0.176776692 : f32
    %40 = vector.broadcast %cst_16 : f32 to vector<8x8xf32>
    %41 = arith.mulf %39, %40 : vector<8x8xf32>
    %cst_17 = arith.constant -1.000000e+30 : f32
    %42 = vector.broadcast %cst_17 : f32 to vector<8x8xf32>
    %43 = arith.select %35, %41, %42 : vector<8x8xi1>, vector<8x8xf32>
    %cst_18 = arith.constant dense<0xFF800000> : vector<8xf32>
    %44 = vector.multi_reduction <maximumf>, %43, %cst_18 [1] : vector<8x8xf32> to vector<8xf32>
    %45 = vector.shape_cast %44 : vector<8xf32> to vector<8x1xf32>
    %46 = vector.broadcast %45 : vector<8x1xf32> to vector<8x8xf32>
    %47 = arith.subf %43, %46 : vector<8x8xf32>
    %48 = math.exp %47 : vector<8x8xf32>
    %cst_19 = arith.constant dense<0.000000e+00> : vector<8xf32>
    %49 = vector.multi_reduction <add>, %48, %cst_19 [1] : vector<8x8xf32> to vector<8xf32>
    %50 = vector.shape_cast %49 : vector<8xf32> to vector<8x1xf32>
    %51 = tpu.reciprocal %50 {approx = true} : vector<8x1xf32> -> vector<8x1xf32>
    %52 = vector.broadcast %51 : vector<8x1xf32> to vector<8x8xf32>
    %53 = arith.mulf %48, %52 : vector<8x8xf32>
    %54 = arith.truncf %53 : vector<8x8xf32> to vector<8x8xbf16>
    %cst_20 = arith.constant dense<0.000000e+00> : vector<8x32xf32>
    %55 = tpu.matmul %54, %38, %cst_20 {dimension_numbers = #tpu.dot_dimension_numbers<[1], [0], [0], [1], [0, 0, 1, 1], [], []>} : vector<8x8xbf16>, vector<8x32xbf16>, vector<8x32xf32> -> vector<8x32xf32>
    %56 = vector.extract_strided_slice %32 {offsets = [0, 32], sizes = [8, 32], strides = [1, 1]} : vector<8x384xbf16> to vector<8x32xbf16>
    %57 = vector.extract_strided_slice %32 {offsets = [0, 160], sizes = [8, 32], strides = [1, 1]} : vector<8x384xbf16> to vector<8x32xbf16>
    %58 = vector.extract_strided_slice %32 {offsets = [0, 288], sizes = [8, 32], strides = [1, 1]} : vector<8x384xbf16> to vector<8x32xbf16>
    %cst_21 = arith.constant dense<0.000000e+00> : vector<8x8xf32>
    %59 = tpu.matmul %56, %57, %cst_21 {dimension_numbers = #tpu.dot_dimension_numbers<[1], [1], [0], [0], [0, 0, 1, 0], [], []>} : vector<8x32xbf16>, vector<8x32xbf16>, vector<8x8xf32> -> vector<8x8xf32>
    %cst_22 = arith.constant 0.176776692 : f32
    %60 = vector.broadcast %cst_22 : f32 to vector<8x8xf32>
    %61 = arith.mulf %59, %60 : vector<8x8xf32>
    %cst_23 = arith.constant -1.000000e+30 : f32
    %62 = vector.broadcast %cst_23 : f32 to vector<8x8xf32>
    %63 = arith.select %35, %61, %62 : vector<8x8xi1>, vector<8x8xf32>
    %cst_24 = arith.constant dense<0xFF800000> : vector<8xf32>
    %64 = vector.multi_reduction <maximumf>, %63, %cst_24 [1] : vector<8x8xf32> to vector<8xf32>
    %65 = vector.shape_cast %64 : vector<8xf32> to vector<8x1xf32>
    %66 = vector.broadcast %65 : vector<8x1xf32> to vector<8x8xf32>
    %67 = arith.subf %63, %66 : vector<8x8xf32>
    %68 = math.exp %67 : vector<8x8xf32>
    %cst_25 = arith.constant dense<0.000000e+00> : vector<8xf32>
    %69 = vector.multi_reduction <add>, %68, %cst_25 [1] : vector<8x8xf32> to vector<8xf32>
    %70 = vector.shape_cast %69 : vector<8xf32> to vector<8x1xf32>
    %71 = tpu.reciprocal %70 {approx = true} : vector<8x1xf32> -> vector<8x1xf32>
    %72 = vector.broadcast %71 : vector<8x1xf32> to vector<8x8xf32>
    %73 = arith.mulf %68, %72 : vector<8x8xf32>
    %74 = arith.truncf %73 : vector<8x8xf32> to vector<8x8xbf16>
    %cst_26 = arith.constant dense<0.000000e+00> : vector<8x32xf32>
    %75 = tpu.matmul %74, %58, %cst_26 {dimension_numbers = #tpu.dot_dimension_numbers<[1], [0], [0], [1], [0, 0, 1, 1], [], []>} : vector<8x8xbf16>, vector<8x32xbf16>, vector<8x32xf32> -> vector<8x32xf32>
    %76 = vector.extract_strided_slice %32 {offsets = [0, 64], sizes = [8, 32], strides = [1, 1]} : vector<8x384xbf16> to vector<8x32xbf16>
    %77 = vector.extract_strided_slice %32 {offsets = [0, 192], sizes = [8, 32], strides = [1, 1]} : vector<8x384xbf16> to vector<8x32xbf16>
    %78 = vector.extract_strided_slice %32 {offsets = [0, 320], sizes = [8, 32], strides = [1, 1]} : vector<8x384xbf16> to vector<8x32xbf16>
    %cst_27 = arith.constant dense<0.000000e+00> : vector<8x8xf32>
    %79 = tpu.matmul %76, %77, %cst_27 {dimension_numbers = #tpu.dot_dimension_numbers<[1], [1], [0], [0], [0, 0, 1, 0], [], []>} : vector<8x32xbf16>, vector<8x32xbf16>, vector<8x8xf32> -> vector<8x8xf32>
    %cst_28 = arith.constant 0.176776692 : f32
    %80 = vector.broadcast %cst_28 : f32 to vector<8x8xf32>
    %81 = arith.mulf %79, %80 : vector<8x8xf32>
    %cst_29 = arith.constant -1.000000e+30 : f32
    %82 = vector.broadcast %cst_29 : f32 to vector<8x8xf32>
    %83 = arith.select %35, %81, %82 : vector<8x8xi1>, vector<8x8xf32>
    %cst_30 = arith.constant dense<0xFF800000> : vector<8xf32>
    %84 = vector.multi_reduction <maximumf>, %83, %cst_30 [1] : vector<8x8xf32> to vector<8xf32>
    %85 = vector.shape_cast %84 : vector<8xf32> to vector<8x1xf32>
    %86 = vector.broadcast %85 : vector<8x1xf32> to vector<8x8xf32>
    %87 = arith.subf %83, %86 : vector<8x8xf32>
    %88 = math.exp %87 : vector<8x8xf32>
    %cst_31 = arith.constant dense<0.000000e+00> : vector<8xf32>
    %89 = vector.multi_reduction <add>, %88, %cst_31 [1] : vector<8x8xf32> to vector<8xf32>
    %90 = vector.shape_cast %89 : vector<8xf32> to vector<8x1xf32>
    %91 = tpu.reciprocal %90 {approx = true} : vector<8x1xf32> -> vector<8x1xf32>
    %92 = vector.broadcast %91 : vector<8x1xf32> to vector<8x8xf32>
    %93 = arith.mulf %88, %92 : vector<8x8xf32>
    %94 = arith.truncf %93 : vector<8x8xf32> to vector<8x8xbf16>
    %cst_32 = arith.constant dense<0.000000e+00> : vector<8x32xf32>
    %95 = tpu.matmul %94, %78, %cst_32 {dimension_numbers = #tpu.dot_dimension_numbers<[1], [0], [0], [1], [0, 0, 1, 1], [], []>} : vector<8x8xbf16>, vector<8x32xbf16>, vector<8x32xf32> -> vector<8x32xf32>
    %96 = vector.extract_strided_slice %32 {offsets = [0, 96], sizes = [8, 32], strides = [1, 1]} : vector<8x384xbf16> to vector<8x32xbf16>
    %97 = vector.extract_strided_slice %32 {offsets = [0, 224], sizes = [8, 32], strides = [1, 1]} : vector<8x384xbf16> to vector<8x32xbf16>
    %98 = vector.extract_strided_slice %32 {offsets = [0, 352], sizes = [8, 32], strides = [1, 1]} : vector<8x384xbf16> to vector<8x32xbf16>
    %cst_33 = arith.constant dense<0.000000e+00> : vector<8x8xf32>
    %99 = tpu.matmul %96, %97, %cst_33 {dimension_numbers = #tpu.dot_dimension_numbers<[1], [1], [0], [0], [0, 0, 1, 0], [], []>} : vector<8x32xbf16>, vector<8x32xbf16>, vector<8x8xf32> -> vector<8x8xf32>
    %cst_34 = arith.constant 0.176776692 : f32
    %100 = vector.broadcast %cst_34 : f32 to vector<8x8xf32>
    %101 = arith.mulf %99, %100 : vector<8x8xf32>
    %cst_35 = arith.constant -1.000000e+30 : f32
    %102 = vector.broadcast %cst_35 : f32 to vector<8x8xf32>
    %103 = arith.select %35, %101, %102 : vector<8x8xi1>, vector<8x8xf32>
    %cst_36 = arith.constant dense<0xFF800000> : vector<8xf32>
    %104 = vector.multi_reduction <maximumf>, %103, %cst_36 [1] : vector<8x8xf32> to vector<8xf32>
    %105 = vector.shape_cast %104 : vector<8xf32> to vector<8x1xf32>
    %106 = vector.broadcast %105 : vector<8x1xf32> to vector<8x8xf32>
    %107 = arith.subf %103, %106 : vector<8x8xf32>
    %108 = math.exp %107 : vector<8x8xf32>
    %cst_37 = arith.constant dense<0.000000e+00> : vector<8xf32>
    %109 = vector.multi_reduction <add>, %108, %cst_37 [1] : vector<8x8xf32> to vector<8xf32>
    %110 = vector.shape_cast %109 : vector<8xf32> to vector<8x1xf32>
    %111 = tpu.reciprocal %110 {approx = true} : vector<8x1xf32> -> vector<8x1xf32>
    %112 = vector.broadcast %111 : vector<8x1xf32> to vector<8x8xf32>
    %113 = arith.mulf %108, %112 : vector<8x8xf32>
    %114 = arith.truncf %113 : vector<8x8xf32> to vector<8x8xbf16>
    %cst_38 = arith.constant dense<0.000000e+00> : vector<8x32xf32>
    %115 = tpu.matmul %114, %98, %cst_38 {dimension_numbers = #tpu.dot_dimension_numbers<[1], [0], [0], [1], [0, 0, 1, 1], [], []>} : vector<8x8xbf16>, vector<8x32xbf16>, vector<8x32xf32> -> vector<8x32xf32>
    %116 = tpu.concatenate %55, %75, %95, %115 in 1 : vector<8x32xf32>, vector<8x32xf32>, vector<8x32xf32>, vector<8x32xf32> -> vector<8x128xf32>
    %117 = arith.truncf %116 : vector<8x128xf32> to vector<8x128xbf16>
    %c0_39 = arith.constant 0 : index
    %c0_40 = arith.constant 0 : index
    %118 = vector.load %arg6[%c0_39, %c0_40] : memref<128x128xbf16, #tpu.memory_space<vmem>>, vector<128x128xbf16>
    %cst_41 = arith.constant dense<0.000000e+00> : vector<8x128xf32>
    %119 = tpu.matmul %117, %118, %cst_41 {dimension_numbers = #tpu.dot_dimension_numbers<[1], [0], [0], [1], [0, 0, 1, 1], [], []>} : vector<8x128xbf16>, vector<128x128xbf16>, vector<8x128xf32> -> vector<8x128xf32>
    %120 = arith.addf %1, %119 : vector<8x128xf32>
    %c0_42 = arith.constant 0 : index
    %c0_43 = arith.constant 0 : index
    %121 = vector.load %arg7[%c0_42, %c0_43] : memref<1x128xf32, #tpu.memory_space<vmem>>, vector<1x128xf32>
    %122 = vector.broadcast %121 : vector<1x128xf32> to vector<8x128xf32>
    %123 = arith.addf %120, %122 : vector<8x128xf32>
    %c0_44 = arith.constant 0 : index
    %c0_45 = arith.constant 0 : index
    %c0_46 = arith.constant 0 : index
    %124 = vector.load %arg8[%c0_44, %c0_45, %c0_46] : memref<1x8x128xf32, #tpu.memory_space<vmem>>, vector<1x8x128xf32>
    %125 = vector.shape_cast %124 : vector<1x8x128xf32> to vector<8x128xf32>
    %126 = vector.shape_cast %123 : vector<8x128xf32> to vector<1x8x128xf32>
    tpu.vector_store %arg8[%c0_44, %c0_45, %c0_46], %126 {strides = array<i32>} : memref<1x8x128xf32, #tpu.memory_space<vmem>>, vector<1x8x128xf32>,
    return
  }
  func.func @transform_0(%arg0: i32) -> (i32, i32, i32) {
    %c0_i32 = arith.constant 0 : i32
    %c0_i32_0 = arith.constant 0 : i32
    %c0_i32_1 = arith.constant 0 : i32
    return %arg0, %c0_i32, %c0_i32_0 : i32, i32, i32
  }
  func.func @transform_1(%arg0: i32) -> (i32, i32) {
    %c0_i32 = arith.constant 0 : i32
    %c0_i32_0 = arith.constant 0 : i32
    %c0_i32_1 = arith.constant 0 : i32
    return %c0_i32, %c0_i32_0 : i32, i32
  }
  func.func @transform_2(%arg0: i32) -> (i32, i32) {
    %c0_i32 = arith.constant 0 : i32
    %c0_i32_0 = arith.constant 0 : i32
    %c0_i32_1 = arith.constant 0 : i32
    return %c0_i32, %c0_i32_0 : i32, i32
  }
  func.func @transform_3(%arg0: i32) -> (i32, i32) {
    %c0_i32 = arith.constant 0 : i32
    %c0_i32_0 = arith.constant 0 : i32
    %c0_i32_1 = arith.constant 0 : i32
    return %c0_i32, %c0_i32_0 : i32, i32
  }
  func.func @transform_4(%arg0: i32) -> (i32, i32) {
    %c0_i32 = arith.constant 0 : i32
    %c0_i32_0 = arith.constant 0 : i32
    %c0_i32_1 = arith.constant 0 : i32
    return %c0_i32, %c0_i32_0 : i32, i32
  }
  func.func @transform_5(%arg0: i32) -> (i32, i32) {
    %c0_i32 = arith.constant 0 : i32
    %c0_i32_0 = arith.constant 0 : i32
    %c0_i32_1 = arith.constant 0 : i32
    return %c0_i32, %c0_i32_0 : i32, i32
  }
  func.func @transform_6(%arg0: i32) -> (i32, i32) {
    %c0_i32 = arith.constant 0 : i32
    %c0_i32_0 = arith.constant 0 : i32
    %c0_i32_1 = arith.constant 0 : i32
    return %c0_i32, %c0_i32_0 : i32, i32
  }
  func.func @transform_7(%arg0: i32) -> (i32, i32, i32) {
    %c0_i32 = arith.constant 0 : i32
    %c0_i32_0 = arith.constant 0 : i32
    %c0_i32_1 = arith.constant 0 : i32
    return %arg0, %c0_i32, %c0_i32_0 : i32, i32, i32
  }
}

</mosaic_0001>

<bundles_post_ra>
// kernel: gpt_forward.9
= control target key start
LH: loop header
LB: loop body
LE: loop exit
PB: predicated region body
PF: predicated region fallthrough
CT: control target
= control target key end

     0   :  { %s426_s0 = inlined_call_operand.vmem [shape: f32[16,128], index: 0, kind: input, shape index: {}]   ;;  %s427_s1 = inlined_call_operand.vmem [shape: f32[1,128], index: 1, kind: input, shape index: {}]   ;;  %s428_s2 = inlined_call_operand.vmem [shape: f32[1,128], index: 2, kind: input, shape index: {}]   ;;  %s429_s3 = inlined_call_operand.vmem [shape: bf16[256,128], index: 3, kind: input, shape index: {}]   ;;  %s430_s4 = inlined_call_operand.hbm [shape: f32[16,256], index: 4, kind: output, shape index: {}]  }
   0x1   :  { %v19_v0 = vld [vmem:[%s426_s0] sm:$0xff]  ;;  %v20_v1 = vld [vmem:[%s426_s0 + $0x8] sm:$0xff] }
   0x2   :  { %23 = vadd.xlane.f32.xlu0 %v19_v0 }
   0x6   :  { %25 = vadd.xlane.f32.xlu0 %v20_v1 }
   0x7   :  { %9 = vsyncpa [#allocation3], 0  ;;  %v293_v2 = vld [vmem:[%s429_s3 + $0x78] sm:$0xff]   ;;  %v295_v4 = vld [vmem:[%s429_s3 + $0x70] sm:$0xff]   ;;  %s335_s26 = smov [#allocation2]  }
   0x8   :  { %v294_v3 = vld [vmem:[%s429_s3 + $0x38] sm:$0xff]   ;;  %272 = vmatprep.subr.bf16.mxu0 %v293_v2  ;;  %v296_v5 = vld [vmem:[%s429_s3 + $0x30] sm:$0xff]   ;;  %v297_v6 = vld [vmem:[%s429_s3 + $0x68] sm:$0xff]   ;;  %s243_s27 = sshll.u32 %s335_s26, 4  ;;  %s244_s27 = int_to_ptr.vmem [resolvable:$true] %s243_s27 }
   0x9   :  { %273 = vmatpush3.bf16.xpose.msra.mxu0 %v294_v3  ;;  %v298_v7 = vld [vmem:[%s429_s3 + $0x28] sm:$0xff]   ;;  %v299_v8 = vld [vmem:[%s429_s3 + $0x60] sm:$0xff]   ;;  %v301_v10 = vld [vmem:[%s429_s3 + $0x58] sm:$0xff]   ;;  %p318_p1 = scmp.lt.s32.totalorder %s244_s27, %s244_s27 }
   0xa   :  { %274 = vmatprep.subr.bf16.mxu0 %v295_v4  ;;  %v300_v9 = vld [vmem:[%s429_s3 + $0x20] sm:$0xff]   ;;  %v302_v19 = vld [vmem:[%s429_s3 + $0x18] sm:$0xff]   ;;  %v303_v20 = vld [vmem:[%s429_s3 + $0x50] sm:$0xff]  }
   0xb   :  { %v304_v21 = vld [vmem:[%s429_s3 + $0x10] sm:$0xff]   ;;  %v305_v22 = vld [vmem:[%s429_s3 + $0x48] sm:$0xff]   ;;  %v307_v24 = vld [vmem:[%s429_s3 + $0x40] sm:$0xff]  }
   0xc   :  { %v306_v23 = vld [vmem:[%s429_s3 + $0x8] sm:$0xff]   ;;  %v308_v25 = vld [vmem:[%s429_s3] sm:$0xff]  }
   0xd   :  { %v254_v34 = vld [vmem:[%s427_s1] ss:$0 sm:$0xff]  ;;  %s313_s1 = scalar_lea.vmem %s244_s27, 512 }
   0xe   :  { %v255_v38 = vld [vmem:[%s428_s2] ss:$0 sm:$0xff]  ;;  %p314_p0 = scmp.ne.s32.totalorder %s244_s27, %s313_s1  ;;  %p319_p2 = scmp.lt.s32.totalorder %s313_s1, %s313_s1 }
  0x10   :  { %p320_p3 = por %p319_p2, %p318_p1 }
  0x11   :  { %275 = vmatpush3.bf16.xpose.msra.mxu0 %v296_v5 }
  0x12   :  { %276 = vmatprep.subr.bf16.mxu0 %v297_v6  ;;  %p321_p4 = pnand %p320_p3, %p314_p0 }
  0x19   :  { %277 = vmatpush3.bf16.xpose.msra.mxu0 %v298_v7 }
  0x1a   :  { %278 = vmatprep.subr.bf16.mxu0 %v299_v8 }
  0x21   :  { %279 = vmatpush3.bf16.xpose.msra.mxu0 %v300_v9 }
  0x22   :  { %280 = vmatprep.subr.bf16.mxu0 %v301_v10 }
  0x29   :  { %281 = vmatpush3.bf16.xpose.msra.mxu0 %v302_v19 }
  0x2a   :  { %282 = vmatprep.subr.bf16.mxu0 %v303_v20 }
  0x31   :  { %283 = vmatpush3.bf16.xpose.msra.mxu0 %v304_v21 }
  0x32   :  { %284 = vmatprep.subr.bf16.mxu0 %v305_v22 }
  0x39   :  { %285 = vmatpush3.bf16.xpose.msra.mxu0 %v306_v23 }
  0x3a   :  { %286 = vmatprep.subr.bf16.mxu0 %v307_v24 }
  0x41   :  { %287 = vmatpush3.bf16.xpose.msra.mxu0 %v308_v25 }
  0x8b   :  { %v24_v11 = vpop.xlane.xlu0 %23 }
  0x8c   :  { %v28_v12 = vmul.f32 0.0078125, %v24_v11 }
  0x8e   :  { %v30_v13 = vsub.f32 %v19_v0, %v28_v12 }
  0x8f   :  { %v26_v14 = vpop.xlane.xlu0 %25 }
  0x90   :  { %v29_v15 = vmul.f32 0.0078125, %v26_v14  ;;  %v32_v16 = vmul.f32 %v30_v13, %v30_v13 }
  0x92   :  { %v31_v17 = vsub.f32 %v20_v1, %v29_v15  ;;  %34 = vadd.xlane.f32.xlu1 %v32_v16 }
  0x94   :  { %v33_v18 = vmul.f32 %v31_v17, %v31_v17 }
  0x96   :  { %36 = vadd.xlane.f32.xlu1 %v33_v18 }
 0x11b   :  { %v35_v26 = vpop.xlane.xlu1 %34 }
 0x11c   :  { %v38_v27 = vmul.f32 0.0078125, %v35_v26 }
 0x11e   :  { %v40_v28 = vadd.f32 1e-05, %v38_v27 }
 0x11f   :  { %v37_v29 = vpop.xlane.xlu1 %36 }
 0x120   :  { %309 = vrsqrt.f32 %v40_v28  ;;  %v39_v30 = vmul.f32 0.0078125, %v37_v29 }
 0x122   :  { %v41_v31 = vadd.f32 1e-05, %v39_v30 }
 0x124   :  { %311 = vrsqrt.f32 %v41_v31 }
 0x12d   :  { %v310_v32 = vpop.eup %309 }
 0x12e   :  { %v44_v33 = vmul.f32 %v310_v32, %v30_v13 }
 0x130   :  { %v52_v37 = vmul.f32 %v254_v34, %v44_v33 }
 0x131   :  { %v312_v35 = vpop.eup %311 }
 0x132   :  { %v45_v36 = vmul.f32 %v312_v35, %v31_v17  ;;  %v60_v40 = vadd.f32 %v255_v38, %v52_v37 }
 0x134   :  { %v53_v39 = vmul.f32 %v254_v34, %v45_v36 }
 0x136   :  { %v61_v41 = vadd.f32 %v255_v38, %v53_v39 }
 0x138   :  { %v62_v42 = vpack.c.bf16 %v61_v41, %v60_v40 }
 0x13a   :  { %288 = vmatprep.mubr.bf16.mxu0 %v62_v42 }
 0x13b   :  { %289 = vmatmul.mubr.bf16.vlgmr.msra.gmra.mxu0 %v62_v42 }
 0x1fb   :  { %v225_v43 = vpop.f32.mrf.mxu0 }
 0x1fc   :  { %234 = vst [vmem:[#allocation2] sm:$0xff] %v225_v43 }
 0x1fd   :  { %v227_v44 = vpop.f32.mrf.mxu0 }
 0x1fe   :  { %235 = vst [vmem:[#allocation2 + $0x8] sm:$0xff] %v227_v44 }
 0x1ff   :  { %v229_v45 = vpop.f32.mrf.mxu0 }
 0x200   :  { %236 = vst [vmem:[#allocation2 + $0x10] sm:$0xff] %v229_v45 }
 0x201   :  { %v231_v46 = vpop.f32.mrf.mxu0 }
 0x202   :  { %237 = vst [vmem:[#allocation2 + $0x18] sm:$0xff] %v231_v46 }
 0x203   :  { %324 = shalt.err (!%p321_p4)
}
 0x204   :  { %s336_s2 = smov 256   ;;  %s337_s28 = smov 16  }
 0x205   :  { %249 = dma.vmem_to_hbm [thread:$0]  %s244_s27, 512, %s430_s4, [#allocation3], %s336_s2, %s336_s2, %s337_s28  }
 0x206   :  { %333 = dma.done.wait [#allocation3], 512  }
 0x207   :  { %334 = vsyncadd [#allocation3], 4294966784 }
 0x208   :  { %253 = vsyncpa [#allocation3], 1 }

// kernel: gpt_forward.5
= control target key start
LH: loop header
LB: loop body
LE: loop exit
PB: predicated region body
PF: predicated region fallthrough
CT: control target
= control target key end

     0   :  { %12 = vsyncpa [#allocation3], 0  ;;  %s1848_s0 = inlined_call_operand.vmem [shape: f32[2,8,128], index: 0, kind: input, shape index: {}]   ;;  %s1849_s1 = inlined_call_operand.vmem [shape: f32[1,128], index: 1, kind: input, shape index: {}]   ;;  %s1850_s2 = inlined_call_operand.vmem [shape: f32[1,128], index: 2, kind: input, shape index: {}]   ;;  %s1851_s3 = inlined_call_operand.hbm [shape: bf16[128,384], index: 3, kind: input, shape index: {}]   ;;  %s1852_s4 = inlined_call_operand.vmem [shape: f32[1,384], index: 4, kind: input, shape index: {}]   ;;  %s1853_s5 = inlined_call_operand.hbm [shape: bf16[128,128], index: 5, kind: input, shape index: {}]   ;;  %s1854_s6 = inlined_call_operand.vmem [shape: f32[1,128], index: 6, kind: input, shape index: {}]   ;;  %s1855_s7 = inlined_call_operand.vmem [shape: f32[2,8,128], index: 7, kind: output, shape index: {}]  }
   0x1   :  { %13 = vsyncpa [#allocation5], 0  ;;  %s1651_s24 = smov 0  }
   0x2 LB: > { %s1599_s25 = smov [#allocation2]   ;;  %s1657_s27 = sadd.s32 4294967295, %s1597_s24   ;;  %s1597_s24 = sphi %s1651_s24, %s19_s24  }
   0x3   : > { %s220_s26 = sshll.u32 %s1599_s25, 4  ;;  %p1258_p0 = scmp.ge.s32.totalorder %s1597_s24, 1  ;;  %s221_s26 = int_to_ptr.vmem [resolvable:$true] %s220_s26 }
   0x4   : > { %p202_p1 = scmp.lt.s32.totalorder %s1597_s24, 3  ;;  %p1449_p3 = scmp.eq.s32.totalorder %s1657_s27, 0 }
   0x5   : > { %s1600_s29 = smov [#allocation4]   ;;  %s1542_s9 = scalar_lea.vmem %s221_s26, 3072 }
   0x6   : > { %p1661_p2 = pnand %p1258_p0, %p202_p1  ;;  %s236_s30 = sshll.u32 %s1600_s29, 4  ;;  %s237_s30 = int_to_ptr.vmem [resolvable:$true] %s236_s30 }
   0x7   : > { %p1543_p7 = scmp.ne.s32.totalorder %s221_s26, %s1542_s9  ;;  %p1550_p10 = scmp.lt.s32.totalorder %s221_s26, %s221_s26 }
   0x8   : > { %p1442_p4 = pneg %p1661_p2  ;;  %p1551_p11 = scmp.lt.s32.totalorder %s1542_s9, %s1542_s9 }
   0xa   : > { %p1670_p5 = pnand %p1449_p3, %p1442_p4  ;;  %p1552_p12 = por %p1551_p11, %p1550_p10 }
   0xc   : > { %p1533_p6 = pneg %p1670_p5 }
   0xe   : > { %p1545_p8 = pnand %p1543_p7, %p1533_p6 }
  0x10   : > { %p1546_p9 = pneg %p1545_p8 }
  0x12   : > { %p1553_p13 = pnand %p1552_p12, %p1546_p9 }
  0x14   : > { %1556 = shalt.err (!%p1553_p13)
}
  0x15   : > { %s1601_s10 = smov 192   ;;  %s1602_s11 = smov 12  }
  0x16   : > { %1445 = dma.hbm_to_vmem [thread:$0]  (!%p1670_p5), %s1851_s3, 3072, %s221_s26, [#allocation3], %s1601_s10, %s1601_s10, %s1602_s11  }
  0x17   : > { %s1568_s14 = scalar_lea.vmem %s237_s30, 1024  ;;  %p1576_p7 = scmp.lt.s32.totalorder %s237_s30, %s237_s30 }
  0x18   : > { %p1569_p0 = scmp.ne.s32.totalorder %s237_s30, %s1568_s14  ;;  %p1577_p8 = scmp.lt.s32.totalorder %s1568_s14, %s1568_s14 }
  0x1a   : > { %p1571_p1 = pnand %p1569_p0, %p1533_p6  ;;  %p1578_p10 = por %p1577_p8, %p1576_p7 }
  0x1c   : > { %p1572_p4 = pneg %p1571_p1 }
  0x1e   : > { %p1579_p9 = pnand %p1578_p10, %p1572_p4 }
  0x20   : > { %1582 = shalt.err (!%p1579_p9)
}
  0x21   : > { %s1603_s15 = smov 64   ;;  %s1604_s16 = smov 4  }
  0x22   : > { %1448 = dma.hbm_to_vmem [thread:$0]  (!%p1670_p5), %s1853_s5, 1024, %s237_s30, [#allocation5], %s1603_s15, %s1603_s15, %s1604_s16  }
  0x23   : > { %262 = sbr.rel (%p1661_p2) target bundleno = 2118 (0x846), region = 48 }
  0x28   : > { %1588 = dma.done.wait (%p1449_p3), [#allocation3], 3072  }
  0x29   : > { %1590 = vsyncadd (%p1449_p3), [#allocation3], 4294964224 }
  0x2a   : > { %1592 = dma.done.wait (%p1449_p3), [#allocation5], 1024  }
  0x2b   : > { %1594 = vsyncadd (%p1449_p3), [#allocation5], 4294966272  ;;  %p296_p6 = scmp.lt.s32.totalorder %s1657_s27, 1  ;;  %v1473_v1 = vld [vmem:[#allocation2 + $0xac] ss:$12 sps:$4 sm:$0xff]   ;;  %v1605_v3 = vmov 0.0   ;;  %v369_v41 = vlaneseq }
  0x2c   : > { %v1475_v2 = vld [vmem:[#allocation2 + $0xa8] ss:$12 sps:$4 sm:$0xff]   ;;  %1346 = vmatprep.subr.bf16.mxu1 %v1605_v3  ;;  %v1476_v4 = vld [vmem:[#allocation2 + $0xb0] ss:$12 sps:$4 sm:$0xff]   ;;  %512 = vmatprep.subr.bf16.mxu0 %v1473_v1  ;;  %v1480_v7 = vld [vmem:[#allocation2 + $0x98] ss:$12 sps:$4 sm:$0xff]  }
  0x2d   : > { %s1859_s27 = smov (!%p296_p6, %s1657_s27), 1  ;;  %v1477_v5 = vld [vmem:[#allocation2 + $0x94] ss:$12 sps:$4 sm:$0xff]   ;;  %513 = vmatpush1.bf16.msra.mxu0 %v1475_v2  ;;  %1347 = vmatpush3.bf16.msra.mxu1 %v1476_v4  ;;  %v1479_v6 = vld [vmem:[#allocation2 + $0x90] ss:$12 sps:$4 sm:$0xff]   ;;  %v1606_v22 = vmov 0  }
  0x2e   : > { %s1265_s19 = sshll.u32 %s1859_s27, 3  ;;  %514 = vmatprep.subr.bf16.mxu0 %v1477_v5  ;;  %1348 = vmatprep.subr.bf16.mxu1 %v1605_v3  ;;  %v1481_v12 = vld [vmem:[#allocation2 + $0x7c] ss:$12 sps:$4 sm:$0xff]   ;;  %v1483_v13 = vld [vmem:[#allocation2 + $0x78] ss:$12 sps:$4 sm:$0xff]   ;;  %vm1607_vm0 = vmmov 0  }
  0x2f   : > { %s299_s22 = scalar_lea.vmem %s1848_s0, %s1265_s19  ;;  %v1484_v14 = vld [vmem:[#allocation2 + $0x80] ss:$12 sps:$4 sm:$0xff]   ;;  %v1485_v15 = vld [vmem:[#allocation2 + $0x64] ss:$12 sps:$4 sm:$0xff]   ;;  %v1488_v17 = vld [vmem:[#allocation2 + $0x68] ss:$12 sps:$4 sm:$0xff]   ;;  %544 = vmatprep.mubr.bf16.mxu0 %v1606_v22  ;;  %1362 = vmatprep.mubr.msk.bf16.mxu1 %vm1607_vm0, %v1605_v3  ;;  %s303_s15 = scalar_lea.vmem %s1855_s7, %s1265_s19 }
  0x30   : > { %v1712_v0 = vld [vmem:[%s299_s22] sm:$0xff]  ;;  %v1489_v18 = vld [vmem:[#allocation2 + $0x4c] ss:$12 sps:$4 sm:$0xff]   ;;  %v1491_v19 = vld [vmem:[#allocation2 + $0x48] ss:$12 sps:$4 sm:$0xff]   ;;  %v1738_v42 = vshrl.u32 %v369_v41, 7 }
  0x31   : > { %308 = vadd.xlane.f32.xlu0 %v1712_v0  ;;  %515 = vmatpush1.bf16.msra.mxu0 %v1479_v6  ;;  %v1487_v16 = vld [vmem:[#allocation2 + $0x60] ss:$12 sps:$4 sm:$0xff]   ;;  %v1492_v20 = vld [vmem:[#allocation2 + $0x50] ss:$12 sps:$4 sm:$0xff]   ;;  %v1496_v24 = vld [vmem:[#allocation2 + $0x38] ss:$12 sps:$4 sm:$0xff]  }
  0x32   : > { %1349 = vmatpush3.bf16.msra.mxu1 %v1480_v7  ;;  %516 = vmatprep.subr.bf16.mxu0 %v1481_v12  ;;  %v1493_v21 = vld [vmem:[#allocation2 + $0x34] ss:$12 sps:$4 sm:$0xff]   ;;  %v1495_v23 = vld [vmem:[#allocation2 + $0x30] ss:$12 sps:$4 sm:$0xff]   ;;  %v1499_v26 = vld [vmem:[#allocation2 + $0x18] ss:$12 sps:$4 sm:$0xff]  }
  0x33   : > { %1350 = vmatprep.subr.bf16.mxu1 %v1605_v3  ;;  %v1497_v25 = vld [vmem:[#allocation2 + $0x1c] ss:$12 sps:$4 sm:$0xff]   ;;  %v1500_v27 = vld [vmem:[#allocation2 + $0x20] ss:$12 sps:$4 sm:$0xff]   ;;  %v1501_v28 = vld [vmem:[#allocation2 + $0x4] ss:$12 sps:$4 sm:$0xff]  }
  0x34   : > { %v1503_v29 = vld [vmem:[#allocation2] ss:$12 sps:$4 sm:$0xff]   ;;  %v1504_v30 = vld [vmem:[#allocation2 + $0x8] ss:$12 sps:$4 sm:$0xff]   ;;  %v375_v43 = vsub.s32 1, %v1738_v42  ;;  %v379_v45 = vsub.s32 2, %v1738_v42 }
  0x35   : > { %517 = vmatpush1.bf16.msra.mxu0 %v1483_v13  ;;  %v1267_v35 = vld [vmem:[%s1849_s1] ss:$0 sm:$0xff]  ;;  %v371_v49 = vsub.s32 0, %v1738_v42  ;;  %vm601_vm1 = vcmask 261120   ;;  %s1608_s8 = smov 96   ;;  %s1609_s9 = smov 32  }
  0x36   : > { %1351 = vmatpush3.bf16.msra.mxu1 %v1484_v14  ;;  %518 = vmatprep.subr.bf16.mxu0 %v1485_v15  ;;  %v1268_v37 = vld [vmem:[%s1850_s2] ss:$0 sm:$0xff]  ;;  %vm666_vm2 = vcmask 1043456   ;;  %v1758_v4 = vand.u32 127, %v369_v41  ;;  %vm650_vm4 = vcmask 64512   ;;  %s1610_s10 = smov 64  }
  0x37   : > { %1352 = vmatprep.subr.bf16.mxu1 %v1605_v3  ;;  %v367_v44 = vld [vmem:[%s1852_s4] sm:$0x7]  ;;  %vm1062_vm5 = vcmask 523264   ;;  %vm1064_vm6 = vcmask 785408  }
  0x38   : > { %v376_v46 = vrot.slane %v367_v44, %v375_v43  ;;  %v380_v52 = vrot.slane %v367_v44, %v379_v45  ;;  %v372_v56 = vrot.slane %v367_v44, %v371_v49  ;;  %vm600_vm3 = vcmp.le.s32.totalorder %v1758_v4, %v1738_v42 }
  0x39   : > { %519 = vmatpush1.bf16.msra.mxu0 %v1487_v16 }
  0x3a   : > { %1353 = vmatpush3.bf16.msra.mxu1 %v1488_v17  ;;  %520 = vmatprep.subr.bf16.mxu0 %v1489_v18 }
  0x3b   : > { %1354 = vmatprep.subr.bf16.mxu1 %v1605_v3 }
  0x3d   : > { %521 = vmatpush1.bf16.msra.mxu0 %v1491_v19 }
  0x3e   : > { %1355 = vmatpush3.bf16.msra.mxu1 %v1492_v20  ;;  %522 = vmatprep.subr.bf16.mxu0 %v1493_v21 }
  0x3f   : > { %1356 = vmatprep.subr.bf16.mxu1 %v1605_v3 }
  0x41   : > { %523 = vmatpush1.bf16.msra.mxu0 %v1495_v23 }
  0x42   : > { %1357 = vmatpush3.bf16.msra.mxu1 %v1496_v24  ;;  %524 = vmatprep.subr.bf16.mxu0 %v1497_v25 }
  0x43   : > { %1358 = vmatprep.subr.bf16.mxu1 %v1605_v3 }
  0x45   : > { %525 = vmatpush1.bf16.msra.mxu0 %v1499_v26 }
  0x46   : > { %1359 = vmatpush3.bf16.msra.mxu1 %v1500_v27  ;;  %526 = vmatprep.subr.bf16.mxu0 %v1501_v28 }
  0x47   : > { %1360 = vmatprep.subr.bf16.mxu1 %v1605_v3 }
  0x49   : > { %527 = vmatpush1.bf16.msra.mxu0 %v1503_v29 }
  0x4a   : > { %1361 = vmatpush3.bf16.msra.mxu1 %v1504_v30  ;;  %1390 = vmatprep.subr.bf16.mxu0 %v1605_v3 }
  0x4b   : > { %1366 = vmatprep.subr.bf16.mxu1 %v1605_v3 }
  0xba   : > { %v309_v8 = vpop.xlane.xlu0 %308 }
  0xbb   : > { %v311_v9 = vmul.f32 0.0078125, %v309_v8 }
  0xbd   : > { %v312_v10 = vsub.f32 %v1712_v0, %v311_v9 }
  0xbf   : > { %v313_v11 = vmul.f32 %v312_v10, %v312_v10 }
  0xc1   : > { %314 = vadd.xlane.f32.xlu0 %v313_v11 }
 0x14a   : > { %v315_v31 = vpop.xlane.xlu0 %314 }
 0x14b   : > { %v316_v32 = vmul.f32 0.0078125, %v315_v31 }
 0x14d   : > { %v317_v33 = vadd.f32 1e-05, %v316_v32 }
 0x14f   : > { %1513 = vrsqrt.f32 %v317_v33 }
 0x15c   : > { %v1514_v34 = vpop.eup %1513 }
 0x15d   : > { %v319_v36 = vmul.f32 %v1514_v34, %v312_v10 }
 0x15f   : > { %v326_v38 = vmul.f32 %v1267_v35, %v319_v36 }
 0x161   : > { %v333_v39 = vadd.f32 %v1268_v37, %v326_v38 }
 0x163   : > { %v334_v40 = vpack.c.bf16 %v333_v39, %v333_v39 }
 0x165   : > { %545 = vmatmul.mubr.bf16.vlgmr.msra.gmra.mxu0 %v334_v40  ;;  %1363 = vmatmul.mubr.bf16.vlgmr.msra.gmra.mxu1 %v334_v40 }
 0x166   : > { %1368 = vmatprep.mubr.msk.bf16.mxu1 %vm1607_vm0, %v1605_v3  ;;  %1392 = vmatprep.mubr.msk.bf16.mxu0 %vm1607_vm0, %v1605_v3 }
 0x225   : > { %v546_v47 = vpop.f32.mrf.mxu0  ;;  %v587_v48 = vpop.f32.mrf.mxu1 }
 0x226   : > { %v588_v60 = vadd.f32 %v587_v48, %v380_v52  ;;  %v547_v62 = vadd.f32 %v546_v47, %v372_v56 }
 0x227   : > { %v548_v50 = vpop.f32.mrf.mxu0  ;;  %v1364_v51 = vpop.f32.mrf.mxu1 }
 0x228   : > { %v549_v53 = vadd.f32 %v548_v50, %v376_v46  ;;  %v1749_v63 = vpack.c.bf16 %v588_v60, %v588_v60  ;;  %v593_v1 = vpack.c.bf16 %v547_v62, %v547_v62 }
 0x229   : > { %v550_v54 = vpop.f32.mrf.mxu0  ;;  %v590_v55 = vpop.f32.mrf.mxu1 }
 0x22a   : > { %v594_v57 = vpack.c.bf16 %v549_v53, %v549_v53  ;;  %v668_v2 = vsel %vm666_vm2, %v1749_v63, 0 }
 0x22b   : > { %v551_v58 = vpop.f32.mrf.mxu0  ;;  %v1365_v59 = vpop.f32.mrf.mxu1 }
 0x22c   : > { %714 = vrot.lane.b32.xlu0 %v594_v57, %s1608_s8  ;;  %v606_v61 = vsel %vm601_vm1, %v594_v57, 0 }
 0x22d   : > { %1367 = vmatpush3.bf16.xpose.msra.mxu1 %v606_v61 }
 0x22e   : > { %1372 = vmatprep.subr.bf16.mxu1 %v1605_v3 }
 0x230   : > { %939 = vrot.lane.b32.xlu0 %v594_v57, %s1609_s9 }
 0x234   : > { %1369 = vmatmul.mubr.msk.bf16.vlgmr.msra.gmra.mxu1 %vm601_vm1, %v593_v1 }
 0x235   : > { %1373 = vmatpush3.bf16.msra.mxu1 %v668_v2  ;;  %1374 = vmatprep.mubr.msk.bf16.mxu1 %vm1607_vm0, %v1605_v3 }
 0x236   : > { %1378 = vmatprep.subr.bf16.mxu1 %v1605_v3 }
 0x29e   : > { %v715_v19 = vpop.permute.xlu0 %714 }
 0x29f   : > { %v720_v28 = vsel %vm601_vm1, %v715_v19, 0 }
 0x2a2   : > { %v940_v23 = vpop.permute.xlu0 %939 }
 0x2a3   : > { %v945_v26 = vsel %vm601_vm1, %v940_v23, 0 }
 0x2f4   : > { %v642_v5 = vpop.f32.mrf.mxu1 }
 0x2f5   : > { %v648_v6 = vmul.f32 0.17677669, %v642_v5 }
 0x2f6   : > { %v1370_v7 = vpop.f32.mrf.mxu1 }
 0x2f7   : > { %v649_v8 = vsel %vm600_vm3, %v648_v6, -1e+30 }
 0x2f8   : > { %v645_v9 = vpop.f32.mrf.mxu1  ;;  %v651_v10 = vsel %vm650_vm4, %v649_v8, -inf }
 0x2f9   : > { %652 = vmax.xlane.f32.xlu1 %v651_v10 }
 0x2fa   : > { %v1371_v11 = vpop.f32.mrf.mxu1 }
 0x382   : > { %v653_v12 = vpop.xlane.xlu1 %652 }
 0x383   : > { %v654_v13 = vsub.f32 %v649_v8, %v653_v12 }
 0x385   : > { %v655_v14 = vmul.f32 1.442695, %v654_v13 }
 0x387   : > { %1515 = vpow2.f32 %v655_v14 }
 0x394   : > { %v1516_v15 = vpop.eup %1515 }
 0x395   : > { %v657_v16 = vsel %vm650_vm4, %v1516_v15, 0.0 }
 0x396   : > { %658 = vadd.xlane.f32.xlu1 %v657_v16 }
 0x3a7   : > { %711 = vrot.lane.b32.xlu1 %v593_v1, %s1608_s8 }
 0x3ab   : > { %827 = vrot.lane.b32.xlu1 %v594_v57, %s1610_s10 }
 0x3af   : > { %825 = vrot.lane.b32.xlu1 %v593_v1, %s1610_s10 }
 0x3b3   : > { %937 = vrot.lane.b32.xlu1 %v593_v1, %s1609_s9 }
 0x41f   : > { %v659_v17 = vpop.xlane.xlu1 %658 }
 0x420   : > { %1517 = vrcp.f32 %v659_v17 }
 0x423   : > { %v712_v18 = vpop.permute.xlu1 %711 }
 0x427   : > { %v828_v20 = vpop.permute.xlu1 %827 }
 0x428   : > { %v833_v21 = vsel %vm601_vm1, %v828_v20, 0 }
 0x429   : > { %1391 = vmatpush3.bf16.xpose.msra.mxu0 %v833_v21 }
 0x42a   : > { %1402 = vmatprep.subr.bf16.mxu0 %v1605_v3 }
 0x42b   : > { %v826_v25 = vpop.permute.xlu1 %825 }
 0x42d   : > { %v1518_v22 = vpop.eup %1517 }
 0x42e   : > { %v661_v24 = vmul.f32 %v1518_v22, %v1516_v15 }
 0x42f   : > { %v938_v29 = vpop.permute.xlu1 %937 }
 0x430   : > { %1393 = vmatmul.mubr.msk.bf16.vlgmr.msra.gmra.mxu0 %vm601_vm1, %v826_v25  ;;  %v662_v27 = vpack.c.bf16 %v661_v24, %v661_v24 }
 0x431   : > { %1403 = vmatpush3.bf16.xpose.msra.mxu0 %v945_v26  ;;  %1404 = vmatprep.mubr.msk.bf16.mxu0 %vm1607_vm0, %v1605_v3  ;;  %v1505_v26 = vld [vmem:[#allocation4 + $0x38] sm:$0xff]  }
 0x432   : > { %1375 = vmatmul.mubr.msk.bf16.vlgmr.msra.gmra.mxu1 %vm650_vm4, %v662_v27  ;;  %1414 = vmatprep.subr.bf16.mxu0 %v1605_v3  ;;  %v1506_v27 = vld [vmem:[#allocation4 + $0x30] sm:$0xff]  }
 0x433   : > { %1379 = vmatpush3.bf16.xpose.msra.mxu1 %v720_v28  ;;  %1380 = vmatprep.mubr.msk.bf16.mxu1 %vm1607_vm0, %v1605_v3  ;;  %v1507_v28 = vld [vmem:[#allocation4 + $0x28] sm:$0xff]  }
 0x434   : > { %1384 = vmatprep.subr.bf16.mxu1 %v1605_v3 }
 0x438   : > { %1405 = vmatmul.mubr.msk.bf16.vlgmr.msra.gmra.mxu0 %vm601_vm1, %v938_v29  ;;  %v1508_v29 = vld [vmem:[#allocation4 + $0x20] sm:$0xff]  }
 0x439   : > { %1430 = vmatprep.mubr.msk.bf16.mxu0 %vm1607_vm0, %v1605_v3  ;;  %1415 = vmatpush3.bf16.msra.mxu0 %v1505_v26 }
 0x43a   : > { %1381 = vmatmul.mubr.msk.bf16.vlgmr.msra.gmra.mxu1 %vm601_vm1, %v712_v18  ;;  %1416 = vmatprep.subr.bf16.mxu0 %v1605_v3 }
 0x43b   : > { %1386 = vmatprep.mubr.msk.bf16.mxu1 %vm1607_vm0, %v1605_v3 }
 0x43d   : > { %1417 = vmatpush3.bf16.msra.mxu0 %v1506_v27 }
 0x43e   : > { %1418 = vmatprep.subr.bf16.mxu0 %v1605_v3 }
 0x441   : > { %1419 = vmatpush3.bf16.msra.mxu0 %v1507_v28 }
 0x442   : > { %1420 = vmatprep.subr.bf16.mxu0 %v1605_v3 }
 0x445   : > { %1421 = vmatpush3.bf16.msra.mxu0 %v1508_v29 }
 0x446   : > { %1422 = vmatprep.subr.bf16.mxu0 %v1605_v3 }
 0x4f0   : > { %v869_v30 = vpop.f32.mrf.mxu0 }
 0x4f1   : > { %v875_v31 = vmul.f32 0.17677669, %v869_v30  ;;  %v1509_v30 = vld [vmem:[#allocation4 + $0x18] sm:$0xff]  }
 0x4f2   : > { %v1789_v32 = vpop.f32.mrf.mxu1  ;;  %v1394_v33 = vpop.f32.mrf.mxu0  ;;  %1423 = vmatpush3.bf16.msra.mxu0 %v1509_v30 }
 0x4f3   : > { %v876_v34 = vsel %vm600_vm3, %v875_v31, -1e+30  ;;  %1424 = vmatprep.subr.bf16.mxu0 %v1605_v3  ;;  %v1510_v31 = vld [vmem:[#allocation4 + $0x10] sm:$0xff]   ;;  %v1511_v33 = vld [vmem:[#allocation4 + $0x8] sm:$0xff]  }
 0x4f4   : > { %v1376_v35 = vpop.f32.mrf.mxu1  ;;  %v872_v36 = vpop.f32.mrf.mxu0  ;;  %v877_v37 = vsel %vm650_vm4, %v876_v34, -inf }
 0x4f5   : > { %878 = vmax.xlane.f32.xlu1 %v877_v37  ;;  %v1512_v36 = vld [vmem:[#allocation4] sm:$0xff]  }
 0x4f6   : > { %v707_v38 = vpop.f32.mrf.mxu1  ;;  %v1395_v39 = vpop.f32.mrf.mxu0  ;;  %1425 = vmatpush3.bf16.msra.mxu0 %v1510_v31 }
 0x4f7   : > { %1426 = vmatprep.subr.bf16.mxu0 %v1605_v3 }
 0x4f8   : > { %v1377_v40 = vpop.f32.mrf.mxu1  ;;  %v981_v41 = vpop.f32.mrf.mxu0 }
 0x4f9   : > { %v987_v45 = vmul.f32 0.17677669, %v981_v41 }
 0x4fa   : > { %v756_v43 = vpop.f32.mrf.mxu1  ;;  %v1406_v44 = vpop.f32.mrf.mxu0  ;;  %1427 = vmatpush3.bf16.msra.mxu0 %v1511_v33 }
 0x4fb   : > { %v762_v46 = vmul.f32 0.17677669, %v756_v43  ;;  %v988_v53 = vsel %vm600_vm3, %v987_v45, -1e+30  ;;  %1428 = vmatprep.subr.bf16.mxu0 %v1605_v3 }
 0x4fc   : > { %v1382_v47 = vpop.f32.mrf.mxu1  ;;  %v984_v48 = vpop.f32.mrf.mxu0  ;;  %v989_v55 = vsel %vm650_vm4, %v988_v53, -inf }
 0x4fd   : > { %v763_v49 = vsel %vm600_vm3, %v762_v46, -1e+30 }
 0x4fe   : > { %v759_v50 = vpop.f32.mrf.mxu1  ;;  %v1407_v51 = vpop.f32.mrf.mxu0  ;;  %v764_v52 = vsel %vm650_vm4, %v763_v49, -inf  ;;  %1429 = vmatpush3.bf16.msra.mxu0 %v1512_v36 }
 0x4ff   : > { %765 = vmax.xlane.f32.xlu0 %v764_v52 }
 0x500   : > { %v1383_v54 = vpop.f32.mrf.mxu1 }
 0x503   : > { %990 = vmax.xlane.f32.xlu0 %v989_v55  ;;  %v1309_v55 = vld [vmem:[%s1854_s6] ss:$0 sm:$0xff] }
 0x57e   : > { %v879_v56 = vpop.xlane.xlu1 %878 }
 0x57f   : > { %v880_v57 = vsub.f32 %v876_v34, %v879_v56 }
 0x581   : > { %v881_v58 = vmul.f32 1.442695, %v880_v57 }
 0x583   : > { %1519 = vpow2.f32 %v881_v58 }
 0x588   : > { %v766_v59 = vpop.xlane.xlu0 %765 }
 0x589   : > { %v767_v60 = vsub.f32 %v763_v49, %v766_v59 }
 0x58b   : > { %v768_v61 = vmul.f32 1.442695, %v767_v60 }
 0x58c   : > { %v991_v62 = vpop.xlane.xlu0 %990 }
 0x58d   : > { %1521 = vpow2.f32 %v768_v61  ;;  %v992_v1 = vsub.f32 %v988_v53, %v991_v62 }
 0x58f   : > { %v993_v2 = vmul.f32 1.442695, %v992_v1 }
 0x590   : > { %v1520_v5 = vpop.eup %1519 }
 0x591   : > { %1523 = vpow2.f32 %v993_v2  ;;  %v883_v42 = vsel %vm650_vm4, %v1520_v5, 0.0 }
 0x592   : > { %884 = vadd.xlane.f32.xlu0 %v883_v42 }
 0x59a   : > { %v1522_v4 = vpop.eup %1521 }
 0x59b   : > { %v770_v6 = vsel %vm650_vm4, %v1522_v4, 0.0 }
 0x59c   : > { %771 = vadd.xlane.f32.xlu0 %v770_v6 }
 0x59e   : > { %v1524_v7 = vpop.eup %1523 }
 0x59f   : > { %v995_v8 = vsel %vm650_vm4, %v1524_v7, 0.0 }
 0x5a0   : > { %996 = vadd.xlane.f32.xlu1 %v995_v8 }
 0x5b1   : > { %889 = vrot.lane.b32.xlu1 %v1749_v63, %s1610_s10 }
 0x5b2   : > { %777 = vrot.lane.b32.xlu0 %v1749_v63, %s1608_s8 }
 0x5b5   : > { %1001 = vrot.lane.b32.xlu1 %v1749_v63, %s1609_s9 }
 0x61b   : > { %v885_v9 = vpop.xlane.xlu0 %884 }
 0x625   : > { %v772_v10 = vpop.xlane.xlu0 %771 }
 0x626   : > { %1525 = vrcp.f32 %v772_v10 }
 0x627   : > { %1527 = vrcp.f32 %v885_v9 }
 0x629   : > { %v778_v11 = vpop.permute.xlu0 %777  ;;  %v997_v13 = vpop.xlane.xlu1 %996 }
 0x62a   : > { %v783_v12 = vsel %vm666_vm2, %v778_v11, 0  ;;  %1529 = vrcp.f32 %v997_v13 }
 0x62b   : > { %1385 = vmatpush3.bf16.msra.mxu1 %v783_v12 }
 0x62c   : > { %1396 = vmatprep.subr.bf16.mxu1 %v1605_v3 }
 0x62d   : > { %v890_v16 = vpop.permute.xlu1 %889 }
 0x62e   : > { %v895_v19 = vsel %vm666_vm2, %v890_v16, 0 }
 0x631   : > { %v1002_v20 = vpop.permute.xlu1 %1001 }
 0x632   : > { %v1007_v23 = vsel %vm666_vm2, %v1002_v20, 0 }
 0x633   : > { %v1526_v14 = vpop.eup %1525 }
 0x634   : > { %v774_v15 = vmul.f32 %v1526_v14, %v1522_v4  ;;  %v1528_v18 = vpop.eup %1527 }
 0x635   : > { %v887_v63 = vmul.f32 %v1528_v18, %v1520_v5 }
 0x636   : > { %v775_v17 = vpack.c.bf16 %v774_v15, %v774_v15 }
 0x637   : > { %v888_v21 = vpack.c.bf16 %v887_v63, %v887_v63  ;;  %v1530_v22 = vpop.eup %1529 }
 0x638   : > { %1387 = vmatmul.mubr.msk.bf16.vlgmr.msra.gmra.mxu1 %vm650_vm4, %v775_v17  ;;  %v999_v24 = vmul.f32 %v1530_v22, %v1524_v7 }
 0x639   : > { %1397 = vmatpush3.bf16.msra.mxu1 %v895_v19  ;;  %1398 = vmatprep.mubr.msk.bf16.mxu1 %vm1607_vm0, %v1605_v3 }
 0x63a   : > { %1408 = vmatprep.subr.bf16.mxu1 %v1605_v3  ;;  %v1000_v25 = vpack.c.bf16 %v999_v24, %v999_v24 }
 0x640   : > { %1399 = vmatmul.mubr.msk.bf16.vlgmr.msra.gmra.mxu1 %vm650_vm4, %v888_v21 }
 0x641   : > { %1409 = vmatpush3.bf16.msra.mxu1 %v1007_v23  ;;  %1410 = vmatprep.mubr.msk.bf16.mxu1 %vm1607_vm0, %v1605_v3 }
 0x648   : > { %1411 = vmatmul.mubr.msk.bf16.vlgmr.msra.gmra.mxu1 %vm650_vm4, %v1000_v25 }
 0x6f8   : > { %v819_v34 = vpop.f32.mrf.mxu1 }
 0x6f9   : > { %1050 = vrot.lane.b32.xlu1 %v819_v34, %s1609_s9 }
 0x6fa   : > { %v1388_v35 = vpop.f32.mrf.mxu1 }
 0x6fc   : > { %v822_v37 = vpop.f32.mrf.mxu1 }
 0x6fe   : > { %v1389_v38 = vpop.f32.mrf.mxu1 }
 0x700   : > { %v931_v39 = vpop.f32.mrf.mxu1 }
 0x701   : > { %1054 = vrot.lane.b32.xlu0 %v931_v39, %s1610_s10 }
 0x702   : > { %v1400_v40 = vpop.f32.mrf.mxu1 }
 0x704   : > { %v934_v41 = vpop.f32.mrf.mxu1 }
 0x706   : > { %v1401_v43 = vpop.f32.mrf.mxu1 }
 0x708   : > { %v1043_v44 = vpop.f32.mrf.mxu1 }
 0x709   : > { %1058 = vrot.lane.b32.xlu1 %v1043_v44, %s1608_s8 }
 0x70a   : > { %v1412_v45 = vpop.f32.mrf.mxu1 }
 0x70c   : > { %v1046_v46 = vpop.f32.mrf.mxu1 }
 0x70e   : > { %v1413_v47 = vpop.f32.mrf.mxu1 }
 0x76b   : > { %v1051_v48 = vpop.permute.xlu1 %1050 }
 0x76c   : > { %v1061_v49 = vsel %vm601_vm1, %v1789_v32, %v1051_v48 }
 0x773   : > { %v1055_v3 = vpop.permute.xlu0 %1054 }
 0x774   : > { %v1063_v50 = vsel %vm1062_vm5, %v1061_v49, %v1055_v3 }
 0x77b   : > { %v1059_v51 = vpop.permute.xlu1 %1058 }
 0x77c   : > { %v1065_v52 = vsel %vm1064_vm6, %v1063_v50, %v1059_v51 }
 0x77d   : > { %v1066_v53 = vpack.c.bf16 %v1065_v52, %v1065_v52 }
 0x77f   : > { %1431 = vmatmul.mubr.bf16.vlgmr.msra.gmra.mxu0 %v1066_v53 }
 0x83f   : > { %v1165_v54 = vpop.f32.mrf.mxu0 }
 0x840   : > { %v1171_v56 = vadd.f32 %v1165_v54, %v1712_v0 }
 0x841   : > { %v1432_v57 = vpop.f32.mrf.mxu0 }
 0x842   : > { %v1179_v58 = vadd.f32 %v1309_v55, %v1171_v56 }
 0x843   : > { %v1168_v32 = vpop.f32.mrf.mxu0 }
 0x844   : > { %1180 = vst [vmem:[%s303_s15] sm:$0xff] %v1179_v58 }
 0x845   : > { %v1433_v59 = vpop.f32.mrf.mxu0 }
 0x846 PF: > { %s19_s24 = sadd.s32 1, %s1597_s24  }
 0x847   : > { %p16_p2 = scmp.ge.s32.totalorder %s19_s24, 4  }
 0x849   :  { %18 = sbr.rel (!%p16_p2) target bundleno = 2 (0x2), region = 87 }
 0x84e   :  { %1200 = vsyncpa [#allocation3], 1 }
 0x84f   :  { %1202 = vsyncpa [#allocation3 + $0x1], 1 }
 0x850   :  { %1203 = vsyncpa [#allocation5], 1 }

// kernel: gpt_forward.6
= control target key start
LH: loop header
LB: loop body
LE: loop exit
PB: predicated region body
PF: predicated region fallthrough
CT: control target
= control target key end

     0   :  { %v1012_v36 = vmov 0   ;;  %s1317_s0 = inlined_call_operand.vmem [shape: f32[16,128], index: 0, kind: input, shape index: {}]   ;;  %s1318_s3 = inlined_call_operand.vmem [shape: bf16[128,512], index: 3, kind: input, shape index: {}]   ;;  %s1319_s1 = inlined_call_operand.vmem [shape: f32[1,128], index: 1, kind: input, shape index: {}]   ;;  %s1320_s2 = inlined_call_operand.vmem [shape: f32[1,128], index: 2, kind: input, shape index: {}]   ;;  %s1321_s5 = inlined_call_operand.vmem [shape: bf16[512,128], index: 5, kind: input, shape index: {}]   ;;  %s1322_s4 = inlined_call_operand.vmem [shape: f32[1,512], index: 4, kind: input, shape index: {}]   ;;  %s1323_s6 = inlined_call_operand.vmem [shape: f32[1,128], index: 6, kind: input, shape index: {}]   ;;  %s1324_s7 = inlined_call_operand.vmem [shape: f32[16,128], index: 7, kind: output, shape index: {}]  }
   0x1   :  { %v1056_v0 = vld [vmem:[%s1317_s0] sm:$0xff]  ;;  %v1062_v1 = vld [vmem:[%s1317_s0 + $0x8] sm:$0xff]  ;;  %317 = vmatprep.mubr.bf16.mxu0 %v1012_v36  ;;  %360 = vmatprep.mubr.bf16.mxu1 %v1012_v36  ;;  %v960_v60 = vld [vmem:[%s1321_s5 + $0x78] sm:$0xff]  }
   0x2   :  { %31 = vadd.xlane.f32.xlu0 %v1056_v0  ;;  %v912_v2 = vld [vmem:[%s1318_s3 + $0xe4] ss:$16 sps:$4 sm:$0xff]   ;;  %v914_v3 = vld [vmem:[%s1318_s3 + $0xec] ss:$16 sps:$4 sm:$0xff]   ;;  %v916_v4 = vld [vmem:[%s1318_s3 + $0xe0] ss:$16 sps:$4 sm:$0xff]  }
   0x3   :  { %285 = vmatprep.subr.bf16.mxu0 %v912_v2  ;;  %v917_v5 = vld [vmem:[%s1318_s3 + $0xe8] ss:$16 sps:$4 sm:$0xff]   ;;  %328 = vmatprep.subr.bf16.mxu1 %v914_v3  ;;  %v918_v14 = vld [vmem:[%s1318_s3 + $0xc4] ss:$16 sps:$4 sm:$0xff]   ;;  %v920_v15 = vld [vmem:[%s1318_s3 + $0xcc] ss:$16 sps:$4 sm:$0xff]  }
   0x4   :  { %286 = vmatpush1.bf16.msra.mxu0 %v916_v4  ;;  %329 = vmatpush1.bf16.msra.mxu1 %v917_v5  ;;  %v922_v16 = vld [vmem:[%s1318_s3 + $0xc0] ss:$16 sps:$4 sm:$0xff]   ;;  %v923_v17 = vld [vmem:[%s1318_s3 + $0xc8] ss:$16 sps:$4 sm:$0xff]   ;;  %v924_v18 = vld [vmem:[%s1318_s3 + $0xa4] ss:$16 sps:$4 sm:$0xff]  }
   0x5   :  { %287 = vmatprep.subr.bf16.mxu0 %v918_v14  ;;  %330 = vmatprep.subr.bf16.mxu1 %v920_v15  ;;  %v926_v19 = vld [vmem:[%s1318_s3 + $0xac] ss:$16 sps:$4 sm:$0xff]   ;;  %v928_v20 = vld [vmem:[%s1318_s3 + $0xa0] ss:$16 sps:$4 sm:$0xff]   ;;  %v929_v21 = vld [vmem:[%s1318_s3 + $0xa8] ss:$16 sps:$4 sm:$0xff]  }
   0x6   :  { %33 = vadd.xlane.f32.xlu0 %v1062_v1  ;;  %v930_v22 = vld [vmem:[%s1318_s3 + $0x84] ss:$16 sps:$4 sm:$0xff]   ;;  %v932_v23 = vld [vmem:[%s1318_s3 + $0x8c] ss:$16 sps:$4 sm:$0xff]   ;;  %v934_v24 = vld [vmem:[%s1318_s3 + $0x80] ss:$16 sps:$4 sm:$0xff]  }
   0x7   :  { %v935_v25 = vld [vmem:[%s1318_s3 + $0x88] ss:$16 sps:$4 sm:$0xff]   ;;  %v936_v26 = vld [vmem:[%s1318_s3 + $0x64] ss:$16 sps:$4 sm:$0xff]   ;;  %v938_v27 = vld [vmem:[%s1318_s3 + $0x6c] ss:$16 sps:$4 sm:$0xff]  }
   0x8   :  { %288 = vmatpush1.bf16.msra.mxu0 %v922_v16  ;;  %331 = vmatpush1.bf16.msra.mxu1 %v923_v17  ;;  %v940_v28 = vld [vmem:[%s1318_s3 + $0x60] ss:$16 sps:$4 sm:$0xff]   ;;  %v941_v29 = vld [vmem:[%s1318_s3 + $0x68] ss:$16 sps:$4 sm:$0xff]   ;;  %v942_v30 = vld [vmem:[%s1318_s3 + $0x44] ss:$16 sps:$4 sm:$0xff]  }
   0x9   :  { %289 = vmatprep.subr.bf16.mxu0 %v924_v18  ;;  %332 = vmatprep.subr.bf16.mxu1 %v926_v19  ;;  %v944_v31 = vld [vmem:[%s1318_s3 + $0x4c] ss:$16 sps:$4 sm:$0xff]   ;;  %v946_v32 = vld [vmem:[%s1318_s3 + $0x40] ss:$16 sps:$4 sm:$0xff]   ;;  %v947_v33 = vld [vmem:[%s1318_s3 + $0x48] ss:$16 sps:$4 sm:$0xff]  }
   0xa   :  { %v948_v34 = vld [vmem:[%s1318_s3 + $0x24] ss:$16 sps:$4 sm:$0xff]   ;;  %v950_v35 = vld [vmem:[%s1318_s3 + $0x2c] ss:$16 sps:$4 sm:$0xff]   ;;  %v952_v37 = vld [vmem:[%s1318_s3 + $0x20] ss:$16 sps:$4 sm:$0xff]  }
   0xb   :  { %v953_v38 = vld [vmem:[%s1318_s3 + $0x28] ss:$16 sps:$4 sm:$0xff]   ;;  %v954_v39 = vld [vmem:[%s1318_s3 + $0x4] ss:$16 sps:$4 sm:$0xff]   ;;  %v956_v40 = vld [vmem:[%s1318_s3 + $0xc] ss:$16 sps:$4 sm:$0xff]  }
   0xc   :  { %290 = vmatpush1.bf16.msra.mxu0 %v928_v20  ;;  %333 = vmatpush1.bf16.msra.mxu1 %v929_v21  ;;  %v958_v41 = vld [vmem:[%s1318_s3] ss:$16 sps:$4 sm:$0xff]   ;;  %v959_v42 = vld [vmem:[%s1318_s3 + $0x8] ss:$16 sps:$4 sm:$0xff]  }
   0xd   :  { %291 = vmatprep.subr.bf16.mxu0 %v930_v22  ;;  %334 = vmatprep.subr.bf16.mxu1 %v932_v23  ;;  %v800_v51 = vld [vmem:[%s1319_s1] ss:$0 sm:$0xff]  ;;  %v961_v61 = vld [vmem:[%s1321_s5 + $0xf8] sm:$0xff]   ;;  %v964_v2 = vld [vmem:[%s1321_s5 + $0x70] sm:$0xff]  }
   0xe   :  { %v801_v55 = vld [vmem:[%s1320_s2] ss:$0 sm:$0xff]  ;;  %v962_v62 = vld [vmem:[%s1321_s5 + $0x38] sm:$0xff]   ;;  %v965_v3 = vld [vmem:[%s1321_s5 + $0xf0] sm:$0xff]  }
   0xf   :  { %v963_v63 = vld [vmem:[%s1321_s5 + $0xb8] sm:$0xff]   ;;  %v966_v4 = vld [vmem:[%s1321_s5 + $0x30] sm:$0xff]   ;;  %v984_v22 = vld [vmem:[%s1321_s5 + $0x48] sm:$0xff]  }
  0x10   :  { %292 = vmatpush1.bf16.msra.mxu0 %v934_v24  ;;  %335 = vmatpush1.bf16.msra.mxu1 %v935_v25  ;;  %v967_v5 = vld [vmem:[%s1321_s5 + $0xb0] sm:$0xff]   ;;  %v976_v14 = vld [vmem:[%s1321_s5 + $0x58] sm:$0xff]   ;;  %v985_v23 = vld [vmem:[%s1321_s5 + $0xc8] sm:$0xff]  }
  0x11   :  { %293 = vmatprep.subr.bf16.mxu0 %v936_v26  ;;  %336 = vmatprep.subr.bf16.mxu1 %v938_v27  ;;  %v977_v15 = vld [vmem:[%s1321_s5 + $0xd8] sm:$0xff]   ;;  %v980_v18 = vld [vmem:[%s1321_s5 + $0x50] sm:$0xff]   ;;  %v986_v24 = vld [vmem:[%s1321_s5 + $0x8] sm:$0xff]  }
  0x12   :  { %v978_v16 = vld [vmem:[%s1321_s5 + $0x18] sm:$0xff]   ;;  %v981_v19 = vld [vmem:[%s1321_s5 + $0xd0] sm:$0xff]   ;;  %v987_v25 = vld [vmem:[%s1321_s5 + $0x88] sm:$0xff]  }
  0x13   :  { %v979_v17 = vld [vmem:[%s1321_s5 + $0x98] sm:$0xff]   ;;  %v982_v20 = vld [vmem:[%s1321_s5 + $0x10] sm:$0xff]   ;;  %v988_v26 = vld [vmem:[%s1321_s5 + $0x40] sm:$0xff]  }
  0x14   :  { %294 = vmatpush1.bf16.msra.mxu0 %v940_v28  ;;  %337 = vmatpush1.bf16.msra.mxu1 %v941_v29  ;;  %v983_v21 = vld [vmem:[%s1321_s5 + $0x90] sm:$0xff]   ;;  %v989_v27 = vld [vmem:[%s1321_s5 + $0xc0] sm:$0xff]  }
  0x15   :  { %295 = vmatprep.subr.bf16.mxu0 %v942_v30  ;;  %338 = vmatprep.subr.bf16.mxu1 %v944_v31  ;;  %v990_v28 = vld [vmem:[%s1321_s5] sm:$0xff]   ;;  %v105_v30 = vlaneseq }
  0x16   :  { %v991_v29 = vld [vmem:[%s1321_s5 + $0x80] sm:$0xff]  }
  0x17   :  { %v106_v31 = vshrl.u32 %v105_v30, 7 }
  0x18   :  { %296 = vmatpush1.bf16.msra.mxu0 %v946_v32  ;;  %339 = vmatpush1.bf16.msra.mxu1 %v947_v33 }
  0x19   :  { %297 = vmatprep.subr.bf16.mxu0 %v948_v34  ;;  %340 = vmatprep.subr.bf16.mxu1 %v950_v35  ;;  %v107_v32 = vsub.s32 0, %v106_v31  ;;  %v115_v33 = vsub.s32 2, %v106_v31  ;;  %v103_v34 = vld [vmem:[%s1322_s4] sm:$0xf]  ;;  %v111_v35 = vsub.s32 1, %v106_v31  ;;  %v119_v36 = vsub.s32 3, %v106_v31 }
  0x1c   :  { %298 = vmatpush1.bf16.msra.mxu0 %v952_v37  ;;  %341 = vmatpush1.bf16.msra.mxu1 %v953_v38  ;;  %v108_v37 = vrot.slane %v103_v34, %v107_v32  ;;  %v116_v38 = vrot.slane %v103_v34, %v115_v33 }
  0x1d   :  { %299 = vmatprep.subr.bf16.mxu0 %v954_v39  ;;  %342 = vmatprep.subr.bf16.mxu1 %v956_v40  ;;  %v112_v39 = vrot.slane %v103_v34, %v111_v35  ;;  %v120_v40 = vrot.slane %v103_v34, %v119_v36 }
  0x20   :  { %300 = vmatpush1.bf16.msra.mxu0 %v958_v41  ;;  %343 = vmatpush1.bf16.msra.mxu1 %v959_v42 }
  0x21   :  { %867 = vmatprep.subr.bf16.mxu0 %v960_v60  ;;  %889 = vmatprep.subr.bf16.mxu1 %v961_v61 }
  0x8b   :  { %v32_v6 = vpop.xlane.xlu0 %31 }
  0x8c   :  { %v36_v7 = vmul.f32 0.0078125, %v32_v6  ;;  %v968_v6 = vld [vmem:[%s1321_s5 + $0x68] sm:$0xff]  }
  0x8e   :  { %v1078_v8 = vsub.f32 %v1056_v0, %v36_v7  ;;  %v969_v7 = vld [vmem:[%s1321_s5 + $0xe8] sm:$0xff]  }
  0x8f   :  { %v34_v9 = vpop.xlane.xlu0 %33 }
  0x90   :  { %v37_v10 = vmul.f32 0.0078125, %v34_v9  ;;  %v40_v11 = vmul.f32 %v1078_v8, %v1078_v8  ;;  %v971_v9 = vld [vmem:[%s1321_s5 + $0xa8] sm:$0xff]  }
  0x92   :  { %v1083_v12 = vsub.f32 %v1062_v1, %v37_v10  ;;  %42 = vadd.xlane.f32.xlu1 %v40_v11  ;;  %v972_v10 = vld [vmem:[%s1321_s5 + $0x60] sm:$0xff]  }
  0x93   :  { %v973_v11 = vld [vmem:[%s1321_s5 + $0xe0] sm:$0xff]  }
  0x94   :  { %v41_v13 = vmul.f32 %v1083_v12, %v1083_v12 }
  0x96   :  { %44 = vadd.xlane.f32.xlu1 %v41_v13  ;;  %v975_v13 = vld [vmem:[%s1321_s5 + $0xa0] sm:$0xff]  }
 0x11b   :  { %v43_v43 = vpop.xlane.xlu1 %42 }
 0x11c   :  { %v46_v44 = vmul.f32 0.0078125, %v43_v43 }
 0x11e   :  { %v48_v45 = vadd.f32 1e-05, %v46_v44 }
 0x11f   :  { %v45_v46 = vpop.xlane.xlu1 %44 }
 0x120   :  { %992 = vrsqrt.f32 %v48_v45  ;;  %v47_v47 = vmul.f32 0.0078125, %v45_v46 }
 0x122   :  { %v49_v48 = vadd.f32 1e-05, %v47_v47 }
 0x124   :  { %994 = vrsqrt.f32 %v49_v48 }
 0x12d   :  { %v993_v49 = vpop.eup %992 }
 0x12e   :  { %v52_v50 = vmul.f32 %v993_v49, %v1078_v8  ;;  %v970_v8 = vld [vmem:[%s1321_s5 + $0x28] sm:$0xff]  }
 0x130   :  { %v60_v54 = vmul.f32 %v800_v51, %v52_v50 }
 0x131   :  { %v995_v52 = vpop.eup %994 }
 0x132   :  { %v53_v53 = vmul.f32 %v995_v52, %v1083_v12  ;;  %v68_v57 = vadd.f32 %v801_v55, %v60_v54  ;;  %v974_v12 = vld [vmem:[%s1321_s5 + $0x20] sm:$0xff]  }
 0x134   :  { %v61_v56 = vmul.f32 %v800_v51, %v53_v53 }
 0x136   :  { %v69_v58 = vadd.f32 %v801_v55, %v61_v56 }
 0x138   :  { %v70_v59 = vpack.c.bf16 %v69_v58, %v68_v57 }
 0x13a   :  { %318 = vmatmul.mubr.bf16.vlgmr.msra.gmra.mxu0 %v70_v59  ;;  %361 = vmatmul.mubr.bf16.vlgmr.msra.gmra.mxu1 %v70_v59 }
 0x13b   :  { %868 = vmatpush3.bf16.msra.mxu0 %v962_v62  ;;  %890 = vmatpush3.bf16.msra.mxu1 %v963_v63 }
 0x13c   :  { %869 = vmatprep.subr.bf16.mxu0 %v964_v2  ;;  %891 = vmatprep.subr.bf16.mxu1 %v965_v3 }
 0x13f   :  { %870 = vmatpush3.bf16.msra.mxu0 %v966_v4  ;;  %892 = vmatpush3.bf16.msra.mxu1 %v967_v5 }
 0x140   :  { %871 = vmatprep.subr.bf16.mxu0 %v968_v6  ;;  %893 = vmatprep.subr.bf16.mxu1 %v969_v7 }
 0x143   :  { %872 = vmatpush3.bf16.msra.mxu0 %v970_v8  ;;  %894 = vmatpush3.bf16.msra.mxu1 %v971_v9 }
 0x144   :  { %873 = vmatprep.subr.bf16.mxu0 %v972_v10  ;;  %895 = vmatprep.subr.bf16.mxu1 %v973_v11 }
 0x147   :  { %874 = vmatpush3.bf16.msra.mxu0 %v974_v12  ;;  %896 = vmatpush3.bf16.msra.mxu1 %v975_v13 }
 0x148   :  { %875 = vmatprep.subr.bf16.mxu0 %v976_v14  ;;  %897 = vmatprep.subr.bf16.mxu1 %v977_v15 }
 0x14b   :  { %876 = vmatpush3.bf16.msra.mxu0 %v978_v16  ;;  %898 = vmatpush3.bf16.msra.mxu1 %v979_v17 }
 0x14c   :  { %877 = vmatprep.subr.bf16.mxu0 %v980_v18  ;;  %899 = vmatprep.subr.bf16.mxu1 %v981_v19 }
 0x14f   :  { %878 = vmatpush3.bf16.msra.mxu0 %v982_v20  ;;  %900 = vmatpush3.bf16.msra.mxu1 %v983_v21 }
 0x150   :  { %879 = vmatprep.subr.bf16.mxu0 %v984_v22  ;;  %901 = vmatprep.subr.bf16.mxu1 %v985_v23 }
 0x153   :  { %880 = vmatpush3.bf16.msra.mxu0 %v986_v24  ;;  %902 = vmatpush3.bf16.msra.mxu1 %v987_v25 }
 0x154   :  { %881 = vmatprep.subr.bf16.mxu0 %v988_v26  ;;  %903 = vmatprep.subr.bf16.mxu1 %v989_v27 }
 0x157   :  { %882 = vmatpush3.bf16.msra.mxu0 %v990_v28  ;;  %904 = vmatpush3.bf16.msra.mxu1 %v991_v29 }
 0x1fa   :  { %v319_v41 = vpop.f32.mrf.mxu0  ;;  %v362_v42 = vpop.f32.mrf.mxu1 }
 0x1fb   :  { %v1278_v43 = vadd.f32 %v319_v41, %v108_v37  ;;  %v1280_v44 = vadd.f32 %v362_v42, %v116_v38 }
 0x1fc   :  { %v321_v45 = vpop.f32.mrf.mxu0  ;;  %v364_v46 = vpop.f32.mrf.mxu1 }
 0x1fd   :  { %v379_v47 = vmul.f32 0.044715, %v1278_v43  ;;  %v381_v48 = vmul.f32 0.044715, %v1280_v44  ;;  %v322_v49 = vadd.f32 %v321_v45, %v112_v39  ;;  %v1284_v50 = vadd.f32 %v364_v46, %v120_v40 }
 0x1fe   :  { %v323_v51 = vpop.f32.mrf.mxu0  ;;  %v366_v52 = vpop.f32.mrf.mxu1  ;;  %v371_v45 = vmul.f32 0.5, %v1278_v43 }
 0x1ff   :  { %v387_v53 = vmul.f32 %v379_v47, %v1278_v43  ;;  %v389_v54 = vmul.f32 %v381_v48, %v1280_v44  ;;  %v380_v55 = vmul.f32 0.044715, %v322_v49  ;;  %v382_v56 = vmul.f32 0.044715, %v1284_v50 }
 0x200   :  { %v324_v57 = vadd.f32 %v323_v51, %v108_v37  ;;  %v1289_v58 = vadd.f32 %v366_v52, %v116_v38  ;;  %v325_v59 = vpop.f32.mrf.mxu0  ;;  %v368_v60 = vpop.f32.mrf.mxu1  ;;  %v372_v41 = vmul.f32 0.5, %v322_v49 }
 0x201   :  { %v395_v61 = vmul.f32 %v387_v53, %v1278_v43  ;;  %v397_v62 = vmul.f32 %v389_v54, %v1280_v44  ;;  %v388_v63 = vmul.f32 %v380_v55, %v322_v49  ;;  %v390_v2 = vmul.f32 %v382_v56, %v1284_v50 }
 0x202   :  { %v383_v3 = vmul.f32 0.044715, %v324_v57  ;;  %v385_v4 = vmul.f32 0.044715, %v1289_v58  ;;  %v326_v5 = vadd.f32 %v325_v59, %v112_v39  ;;  %v369_v6 = vadd.f32 %v368_v60, %v120_v40 }
 0x203   :  { %v403_v7 = vadd.f32 %v395_v61, %v1278_v43  ;;  %v405_v8 = vadd.f32 %v397_v62, %v1280_v44  ;;  %v396_v9 = vmul.f32 %v388_v63, %v322_v49  ;;  %v398_v10 = vmul.f32 %v390_v2, %v1284_v50 }
 0x204   :  { %v391_v11 = vmul.f32 %v383_v3, %v324_v57  ;;  %v393_v12 = vmul.f32 %v385_v4, %v1289_v58  ;;  %v384_v13 = vmul.f32 0.044715, %v326_v5  ;;  %v386_v14 = vmul.f32 0.044715, %v369_v6 }
 0x205   :  { %v411_v15 = vmul.f32 0.7978846, %v403_v7  ;;  %v413_v16 = vmul.f32 0.7978846, %v405_v8  ;;  %v404_v17 = vadd.f32 %v396_v9, %v322_v49  ;;  %v406_v23 = vadd.f32 %v398_v10, %v1284_v50 }
 0x206   :  { %v399_v18 = vmul.f32 %v391_v11, %v324_v57  ;;  %v401_v19 = vmul.f32 %v393_v12, %v1289_v58  ;;  %v392_v20 = vmul.f32 %v384_v13, %v326_v5  ;;  %v394_v21 = vmul.f32 %v386_v14, %v369_v6  ;;  %v834_v12 = vld [vmem:[%s1323_s6] ss:$0 sm:$0xff] }
 0x207   :  { %v412_v22 = vmul.f32 0.7978846, %v404_v17  ;;  %996 = vtanh.f32 %v411_v15  ;;  %v414_v28 = vmul.f32 0.7978846, %v406_v23  ;;  %v375_v51 = vmul.f32 0.5, %v324_v57 }
 0x208   :  { %v407_v24 = vadd.f32 %v399_v18, %v324_v57  ;;  %v409_v25 = vadd.f32 %v401_v19, %v1289_v58  ;;  %v400_v26 = vmul.f32 %v392_v20, %v326_v5  ;;  %998 = vtanh.f32 %v413_v16 }
 0x209   :  { %v402_v27 = vmul.f32 %v394_v21, %v369_v6  ;;  %1000 = vtanh.f32 %v412_v22  ;;  %v376_v55 = vmul.f32 0.5, %v326_v5  ;;  %v377_v59 = vmul.f32 0.5, %v1289_v58 }
 0x20a   :  { %v415_v29 = vmul.f32 0.7978846, %v407_v24  ;;  %v417_v30 = vmul.f32 0.7978846, %v409_v25  ;;  %v408_v31 = vadd.f32 %v400_v26, %v326_v5  ;;  %1002 = vtanh.f32 %v414_v28 }
 0x20b   :  { %v410_v32 = vadd.f32 %v402_v27, %v369_v6  ;;  %v374_v61 = vmul.f32 0.5, %v1284_v50  ;;  %v378_v62 = vmul.f32 0.5, %v369_v6  ;;  %v373_v43 = vmul.f32 0.5, %v1280_v44 }
 0x20c   :  { %1004 = vtanh.f32 %v415_v29  ;;  %v416_v33 = vmul.f32 0.7978846, %v408_v31 }
 0x20d   :  { %1006 = vtanh.f32 %v417_v30  ;;  %v418_v34 = vmul.f32 0.7978846, %v410_v32 }
 0x20e   :  { %1008 = vtanh.f32 %v416_v33 }
 0x20f   :  { %1010 = vtanh.f32 %v418_v34 }
 0x214   :  { %v997_v35 = vpop.eup %996 }
 0x215   :  { %v999_v36 = vpop.eup %998  ;;  %v427_v52 = vadd.f32 1.0, %v997_v35 }
 0x216   :  { %v1001_v37 = vpop.eup %1000  ;;  %v429_v60 = vadd.f32 1.0, %v999_v36 }
 0x217   :  { %v1003_v38 = vpop.eup %1002  ;;  %v428_v42 = vadd.f32 1.0, %v1001_v37  ;;  %v435_v8 = vmul.f32 %v427_v52, %v371_v45 }
 0x218   :  { %v430_v48 = vadd.f32 1.0, %v1003_v38  ;;  %v437_v10 = vmul.f32 %v429_v60, %v373_v43 }
 0x219   :  { %v1005_v39 = vpop.eup %1004  ;;  %v436_v2 = vmul.f32 %v428_v42, %v372_v41 }
 0x21a   :  { %v1007_v40 = vpop.eup %1006  ;;  %v431_v46 = vadd.f32 1.0, %v1005_v39  ;;  %v438_v7 = vmul.f32 %v430_v48, %v374_v61 }
 0x21b   :  { %v1009_v47 = vpop.eup %1008  ;;  %v433_v53 = vadd.f32 1.0, %v1007_v40 }
 0x21c   :  { %v1011_v54 = vpop.eup %1010  ;;  %v432_v56 = vadd.f32 1.0, %v1009_v47  ;;  %v439_v49 = vmul.f32 %v431_v46, %v375_v51 }
 0x21d   :  { %v434_v63 = vadd.f32 1.0, %v1011_v54  ;;  %v441_v4 = vmul.f32 %v433_v53, %v377_v59 }
 0x21e   :  { %v440_v3 = vmul.f32 %v432_v56, %v376_v55  ;;  %v443_v11 = vpack.c.bf16 %v439_v49, %v435_v8 }
 0x21f   :  { %v442_v57 = vmul.f32 %v434_v63, %v378_v62  ;;  %v445_v58 = vpack.c.bf16 %v441_v4, %v437_v10 }
 0x220   :  { %v444_v9 = vpack.c.bf16 %v440_v3, %v436_v2 }
 0x221   :  { %v446_v5 = vpack.c.bf16 %v442_v57, %v438_v7 }
 0x222   :  { %742 = vmatprep.mubr.bf16.mxu0 %v444_v9 }
 0x223   :  { %783 = vmatprep.mubr.bf16.mxu1 %v446_v5  ;;  %743 = vmatmul.mubr.bf16.vlgmr.msra.gmra.mxu0 %v443_v11 }
 0x224   :  { %784 = vmatmul.mubr.bf16.vlgmr.msra.gmra.mxu1 %v445_v58 }
 0x2e3   :  { %v883_v50 = vpop.f32.mrf.mxu0 }
 0x2e4   :  { %v905_v6 = vpop.f32.mrf.mxu1 }
 0x2e5   :  { %v884_v44 = vpop.f32.mrf.mxu0 }
 0x2e6   :  { %v885_v13 = vadd.f32 %v884_v44, %v883_v50  ;;  %v906_v14 = vpop.f32.mrf.mxu1 }
 0x2e7   :  { %v886_v15 = vpop.f32.mrf.mxu0  ;;  %v907_v17 = vadd.f32 %v906_v14, %v905_v6 }
 0x2e8   :  { %v745_v16 = vadd.f32 %v885_v13, %v834_v12  ;;  %v908_v18 = vpop.f32.mrf.mxu1 }
 0x2e9   :  { %v887_v19 = vpop.f32.mrf.mxu0 }
 0x2ea   :  { %v786_v20 = vadd.f32 %v907_v17, %v745_v16  ;;  %v888_v21 = vadd.f32 %v887_v19, %v886_v15  ;;  %v909_v22 = vpop.f32.mrf.mxu1 }
 0x2eb   :  { %v910_v25 = vadd.f32 %v909_v22, %v908_v18 }
 0x2ec   :  { %v792_v23 = vadd.f32 %v786_v20, %v1056_v0  ;;  %v748_v24 = vadd.f32 %v888_v21, %v834_v12 }
 0x2ee   :  { %794 = vst [vmem:[%s1324_s7] sm:$0xff] %v792_v23  ;;  %v789_v26 = vadd.f32 %v910_v25, %v748_v24 }
 0x2f0   :  { %v793_v27 = vadd.f32 %v789_v26, %v1062_v1 }
 0x2f2   :  { %795 = vst [vmem:[%s1324_s7 + $0x8] sm:$0xff] %v793_v27 }

// kernel: gpt_forward.7
= control target key start
LH: loop header
LB: loop body
LE: loop exit
PB: predicated region body
PF: predicated region fallthrough
CT: control target
= control target key end

     0   :  { %s1504_s24 = smov 0   ;;  %s1752_s0 = inlined_call_operand.vmem [shape: f32[2,8,128], index: 0, kind: input, shape index: {}]   ;;  %s1753_s1 = inlined_call_operand.vmem [shape: f32[1,128], index: 1, kind: input, shape index: {}]   ;;  %s1754_s2 = inlined_call_operand.vmem [shape: f32[1,128], index: 2, kind: input, shape index: {}]   ;;  %s1755_s3 = inlined_call_operand.vmem [shape: bf16[128,384], index: 3, kind: input, shape index: {}]   ;;  %s1756_s4 = inlined_call_operand.vmem [shape: f32[1,384], index: 4, kind: input, shape index: {}]   ;;  %s1757_s5 = inlined_call_operand.vmem [shape: bf16[128,128], index: 5, kind: input, shape index: {}]   ;;  %s1758_s6 = inlined_call_operand.vmem [shape: f32[1,128], index: 6, kind: input, shape index: {}]   ;;  %s1759_s7 = inlined_call_operand.vmem [shape: f32[2,8,128], index: 7, kind: output, shape index: {}]  }
   0x1 LB: > { %s1204_s25 = sadd.s32 4294967295, %s1456_s24   ;;  %p1208_p0 = scmp.ge.s32.totalorder %s1456_s24, 1  ;;  %s1456_s24 = sphi %s1504_s24, %s17_s24  }
   0x2   : > { %p236_p1 = scmp.lt.s32.totalorder %s1456_s24, 3 }
   0x4   : > { %p237_p2 = pnand %p1208_p0, %p236_p1 }
   0x5   : > { %p266_p3 = scmp.lt.s32.totalorder (!%p237_p2), %s1204_s25, 1  ;;  %s1461_s21 = smov (!%p237_p2), 96  }
   0x6   : > { %240 = sbr.rel (%p237_p2) target bundleno = 2084 (0x824), region = 48  ;;  %s1462_s22 = smov (!%p237_p2), 32  }
   0x7   : > { %s1463_s23 = smov (!%p237_p2), 64  }
   0xb   : > { %s1761_s25 = smov (!%p266_p3, %s1204_s25), 1  ;;  %v1392_v1 = vld [vmem:[%s1755_s3 + $0xac] ss:$12 sps:$4 sm:$0xff]   ;;  %v1394_v2 = vld [vmem:[%s1755_s3 + $0xa8] ss:$12 sps:$4 sm:$0xff]   ;;  %v1458_v3 = vmov 0.0   ;;  %v339_v41 = vlaneseq }
   0xc   : > { %s1209_s26 = sshll.u32 %s1761_s25, 3  ;;  %1290 = vmatprep.subr.bf16.mxu1 %v1458_v3  ;;  %v1395_v4 = vld [vmem:[%s1755_s3 + $0xb0] ss:$12 sps:$4 sm:$0xff]   ;;  %v1396_v5 = vld [vmem:[%s1755_s3 + $0x94] ss:$12 sps:$4 sm:$0xff]   ;;  %482 = vmatprep.subr.bf16.mxu0 %v1392_v1  ;;  %v1459_v22 = vmov 0  }
   0xd   : > { %s269_s29 = scalar_lea.vmem %s1752_s0, %s1209_s26  ;;  %483 = vmatpush1.bf16.msra.mxu0 %v1394_v2  ;;  %1291 = vmatpush3.bf16.msra.mxu1 %v1395_v4  ;;  %v1398_v6 = vld [vmem:[%s1755_s3 + $0x90] ss:$12 sps:$4 sm:$0xff]   ;;  %v1399_v7 = vld [vmem:[%s1755_s3 + $0x98] ss:$12 sps:$4 sm:$0xff]   ;;  %v1403_v14 = vld [vmem:[%s1755_s3 + $0x80] ss:$12 sps:$4 sm:$0xff]   ;;  %s273_s27 = scalar_lea.vmem %s1759_s7, %s1209_s26 }
   0xe   : > { %v1520_v0 = vld [vmem:[%s269_s29] sm:$0xff]  ;;  %484 = vmatprep.subr.bf16.mxu0 %v1396_v5  ;;  %1292 = vmatprep.subr.bf16.mxu1 %v1458_v3  ;;  %v1400_v12 = vld [vmem:[%s1755_s3 + $0x7c] ss:$12 sps:$4 sm:$0xff]   ;;  %v1408_v18 = vld [vmem:[%s1755_s3 + $0x4c] ss:$12 sps:$4 sm:$0xff]   ;;  %vm1460_vm0 = vmmov 0  }
   0xf   : > { %278 = vadd.xlane.f32.xlu0 %v1520_v0  ;;  %v1402_v13 = vld [vmem:[%s1755_s3 + $0x78] ss:$12 sps:$4 sm:$0xff]   ;;  %v1406_v16 = vld [vmem:[%s1755_s3 + $0x60] ss:$12 sps:$4 sm:$0xff]   ;;  %v1407_v17 = vld [vmem:[%s1755_s3 + $0x68] ss:$12 sps:$4 sm:$0xff]   ;;  %514 = vmatprep.mubr.bf16.mxu0 %v1459_v22 }
  0x10   : > { %v1404_v15 = vld [vmem:[%s1755_s3 + $0x64] ss:$12 sps:$4 sm:$0xff]   ;;  %v1410_v19 = vld [vmem:[%s1755_s3 + $0x48] ss:$12 sps:$4 sm:$0xff]   ;;  %1306 = vmatprep.mubr.msk.bf16.mxu1 %vm1460_vm0, %v1458_v3  ;;  %v1419_v27 = vld [vmem:[%s1755_s3 + $0x20] ss:$12 sps:$4 sm:$0xff]  }
  0x11   : > { %485 = vmatpush1.bf16.msra.mxu0 %v1398_v6  ;;  %1293 = vmatpush3.bf16.msra.mxu1 %v1399_v7  ;;  %v1411_v20 = vld [vmem:[%s1755_s3 + $0x50] ss:$12 sps:$4 sm:$0xff]   ;;  %v1412_v21 = vld [vmem:[%s1755_s3 + $0x34] ss:$12 sps:$4 sm:$0xff]   ;;  %v1415_v24 = vld [vmem:[%s1755_s3 + $0x38] ss:$12 sps:$4 sm:$0xff]  }
  0x12   : > { %1294 = vmatprep.subr.bf16.mxu1 %v1458_v3  ;;  %486 = vmatprep.subr.bf16.mxu0 %v1400_v12  ;;  %v1414_v23 = vld [vmem:[%s1755_s3 + $0x30] ss:$12 sps:$4 sm:$0xff]   ;;  %v1418_v26 = vld [vmem:[%s1755_s3 + $0x18] ss:$12 sps:$4 sm:$0xff]   ;;  %v1422_v29 = vld [vmem:[%s1755_s3] ss:$12 sps:$4 sm:$0xff]  }
  0x13   : > { %v1416_v25 = vld [vmem:[%s1755_s3 + $0x1c] ss:$12 sps:$4 sm:$0xff]   ;;  %v1420_v28 = vld [vmem:[%s1755_s3 + $0x4] ss:$12 sps:$4 sm:$0xff]   ;;  %v1211_v35 = vld [vmem:[%s1753_s1] ss:$0 sm:$0xff] }
  0x14   : > { %v1423_v30 = vld [vmem:[%s1755_s3 + $0x8] ss:$12 sps:$4 sm:$0xff]   ;;  %v1212_v37 = vld [vmem:[%s1754_s2] ss:$0 sm:$0xff]  ;;  %v1618_v42 = vshrl.u32 %v339_v41, 7  ;;  %vm571_vm1 = vcmask 261120  }
  0x15   : > { %487 = vmatpush1.bf16.msra.mxu0 %v1402_v13  ;;  %1295 = vmatpush3.bf16.msra.mxu1 %v1403_v14  ;;  %v337_v44 = vld [vmem:[%s1756_s4] sm:$0x7]  ;;  %vm636_vm2 = vcmask 1043456   ;;  %v1638_v4 = vand.u32 127, %v339_v41  ;;  %vm620_vm4 = vcmask 64512   ;;  %vm1032_vm5 = vcmask 523264  }
  0x16   : > { %1296 = vmatprep.subr.bf16.mxu1 %v1458_v3  ;;  %488 = vmatprep.subr.bf16.mxu0 %v1404_v15  ;;  %v345_v43 = vsub.s32 1, %v1618_v42  ;;  %v349_v45 = vsub.s32 2, %v1618_v42  ;;  %v341_v49 = vsub.s32 0, %v1618_v42  ;;  %vm1034_vm6 = vcmask 785408  }
  0x17   : > { %vm570_vm3 = vcmp.le.s32.totalorder %v1638_v4, %v1618_v42 }
  0x18   : > { %v346_v46 = vrot.slane %v337_v44, %v345_v43  ;;  %v350_v52 = vrot.slane %v337_v44, %v349_v45  ;;  %v342_v56 = vrot.slane %v337_v44, %v341_v49 }
  0x19   : > { %489 = vmatpush1.bf16.msra.mxu0 %v1406_v16  ;;  %1297 = vmatpush3.bf16.msra.mxu1 %v1407_v17 }
  0x1a   : > { %490 = vmatprep.subr.bf16.mxu0 %v1408_v18  ;;  %1298 = vmatprep.subr.bf16.mxu1 %v1458_v3 }
  0x1d   : > { %491 = vmatpush1.bf16.msra.mxu0 %v1410_v19  ;;  %1299 = vmatpush3.bf16.msra.mxu1 %v1411_v20 }
  0x1e   : > { %492 = vmatprep.subr.bf16.mxu0 %v1412_v21  ;;  %1300 = vmatprep.subr.bf16.mxu1 %v1458_v3 }
  0x21   : > { %493 = vmatpush1.bf16.msra.mxu0 %v1414_v23  ;;  %1301 = vmatpush3.bf16.msra.mxu1 %v1415_v24 }
  0x22   : > { %494 = vmatprep.subr.bf16.mxu0 %v1416_v25  ;;  %1302 = vmatprep.subr.bf16.mxu1 %v1458_v3 }
  0x25   : > { %495 = vmatpush1.bf16.msra.mxu0 %v1418_v26  ;;  %1303 = vmatpush3.bf16.msra.mxu1 %v1419_v27 }
  0x26   : > { %496 = vmatprep.subr.bf16.mxu0 %v1420_v28  ;;  %1304 = vmatprep.subr.bf16.mxu1 %v1458_v3 }
  0x29   : > { %497 = vmatpush1.bf16.msra.mxu0 %v1422_v29  ;;  %1305 = vmatpush3.bf16.msra.mxu1 %v1423_v30 }
  0x2a   : > { %1310 = vmatprep.subr.bf16.mxu1 %v1458_v3  ;;  %1334 = vmatprep.subr.bf16.mxu0 %v1458_v3 }
  0x98   : > { %v279_v8 = vpop.xlane.xlu0 %278 }
  0x99   : > { %v281_v9 = vmul.f32 0.0078125, %v279_v8 }
  0x9b   : > { %v282_v10 = vsub.f32 %v1520_v0, %v281_v9 }
  0x9d   : > { %v283_v11 = vmul.f32 %v282_v10, %v282_v10 }
  0x9f   : > { %284 = vadd.xlane.f32.xlu0 %v283_v11 }
 0x128   : > { %v285_v31 = vpop.xlane.xlu0 %284 }
 0x129   : > { %v286_v32 = vmul.f32 0.0078125, %v285_v31 }
 0x12b   : > { %v287_v33 = vadd.f32 1e-05, %v286_v32 }
 0x12d   : > { %1432 = vrsqrt.f32 %v287_v33 }
 0x13a   : > { %v1433_v34 = vpop.eup %1432 }
 0x13b   : > { %v289_v36 = vmul.f32 %v1433_v34, %v282_v10 }
 0x13d   : > { %v296_v38 = vmul.f32 %v1211_v35, %v289_v36 }
 0x13f   : > { %v303_v39 = vadd.f32 %v1212_v37, %v296_v38 }
 0x141   : > { %v304_v40 = vpack.c.bf16 %v303_v39, %v303_v39 }
 0x143   : > { %515 = vmatmul.mubr.bf16.vlgmr.msra.gmra.mxu0 %v304_v40  ;;  %1307 = vmatmul.mubr.bf16.vlgmr.msra.gmra.mxu1 %v304_v40 }
 0x144   : > { %1312 = vmatprep.mubr.msk.bf16.mxu1 %vm1460_vm0, %v1458_v3  ;;  %1336 = vmatprep.mubr.msk.bf16.mxu0 %vm1460_vm0, %v1458_v3 }
 0x203   : > { %v516_v47 = vpop.f32.mrf.mxu0  ;;  %v557_v48 = vpop.f32.mrf.mxu1 }
 0x204   : > { %v558_v60 = vadd.f32 %v557_v48, %v350_v52  ;;  %v517_v62 = vadd.f32 %v516_v47, %v342_v56 }
 0x205   : > { %v518_v50 = vpop.f32.mrf.mxu0  ;;  %v1308_v51 = vpop.f32.mrf.mxu1 }
 0x206   : > { %v519_v53 = vadd.f32 %v518_v50, %v346_v46  ;;  %v1629_v63 = vpack.c.bf16 %v558_v60, %v558_v60  ;;  %v563_v1 = vpack.c.bf16 %v517_v62, %v517_v62 }
 0x207   : > { %v520_v54 = vpop.f32.mrf.mxu0  ;;  %v560_v55 = vpop.f32.mrf.mxu1 }
 0x208   : > { %v564_v57 = vpack.c.bf16 %v519_v53, %v519_v53  ;;  %v638_v2 = vsel %vm636_vm2, %v1629_v63, 0 }
 0x209   : > { %v521_v58 = vpop.f32.mrf.mxu0  ;;  %v1309_v59 = vpop.f32.mrf.mxu1 }
 0x20a   : > { %684 = vrot.lane.b32.xlu0 %v564_v57, %s1461_s21  ;;  %v576_v61 = vsel %vm571_vm1, %v564_v57, 0 }
 0x20b   : > { %1311 = vmatpush3.bf16.xpose.msra.mxu1 %v576_v61 }
 0x20c   : > { %1316 = vmatprep.subr.bf16.mxu1 %v1458_v3 }
 0x20e   : > { %909 = vrot.lane.b32.xlu0 %v564_v57, %s1462_s22 }
 0x212   : > { %1313 = vmatmul.mubr.msk.bf16.vlgmr.msra.gmra.mxu1 %vm571_vm1, %v563_v1 }
 0x213   : > { %1317 = vmatpush3.bf16.msra.mxu1 %v638_v2  ;;  %1318 = vmatprep.mubr.msk.bf16.mxu1 %vm1460_vm0, %v1458_v3 }
 0x214   : > { %1322 = vmatprep.subr.bf16.mxu1 %v1458_v3 }
 0x27c   : > { %v685_v19 = vpop.permute.xlu0 %684 }
 0x27d   : > { %v690_v28 = vsel %vm571_vm1, %v685_v19, 0 }
 0x280   : > { %v910_v23 = vpop.permute.xlu0 %909 }
 0x281   : > { %v915_v26 = vsel %vm571_vm1, %v910_v23, 0 }
 0x2d2   : > { %v612_v5 = vpop.f32.mrf.mxu1 }
 0x2d3   : > { %v618_v6 = vmul.f32 0.17677669, %v612_v5 }
 0x2d4   : > { %v1314_v7 = vpop.f32.mrf.mxu1 }
 0x2d5   : > { %v619_v8 = vsel %vm570_vm3, %v618_v6, -1e+30 }
 0x2d6   : > { %v615_v9 = vpop.f32.mrf.mxu1  ;;  %v621_v10 = vsel %vm620_vm4, %v619_v8, -inf }
 0x2d7   : > { %622 = vmax.xlane.f32.xlu1 %v621_v10 }
 0x2d8   : > { %v1315_v11 = vpop.f32.mrf.mxu1 }
 0x360   : > { %v623_v12 = vpop.xlane.xlu1 %622 }
 0x361   : > { %v624_v13 = vsub.f32 %v619_v8, %v623_v12 }
 0x363   : > { %v625_v14 = vmul.f32 1.442695, %v624_v13 }
 0x365   : > { %1434 = vpow2.f32 %v625_v14 }
 0x372   : > { %v1435_v15 = vpop.eup %1434 }
 0x373   : > { %v627_v16 = vsel %vm620_vm4, %v1435_v15, 0.0 }
 0x374   : > { %628 = vadd.xlane.f32.xlu1 %v627_v16 }
 0x385   : > { %681 = vrot.lane.b32.xlu1 %v563_v1, %s1461_s21 }
 0x389   : > { %797 = vrot.lane.b32.xlu1 %v564_v57, %s1463_s23 }
 0x38d   : > { %795 = vrot.lane.b32.xlu1 %v563_v1, %s1463_s23 }
 0x391   : > { %907 = vrot.lane.b32.xlu1 %v563_v1, %s1462_s22 }
 0x3fd   : > { %v629_v17 = vpop.xlane.xlu1 %628 }
 0x3fe   : > { %1436 = vrcp.f32 %v629_v17 }
 0x401   : > { %v682_v18 = vpop.permute.xlu1 %681 }
 0x405   : > { %v798_v20 = vpop.permute.xlu1 %797 }
 0x406   : > { %v803_v21 = vsel %vm571_vm1, %v798_v20, 0 }
 0x407   : > { %1335 = vmatpush3.bf16.xpose.msra.mxu0 %v803_v21 }
 0x408   : > { %1346 = vmatprep.subr.bf16.mxu0 %v1458_v3 }
 0x409   : > { %v796_v25 = vpop.permute.xlu1 %795 }
 0x40b   : > { %v1437_v22 = vpop.eup %1436 }
 0x40c   : > { %v631_v24 = vmul.f32 %v1437_v22, %v1435_v15 }
 0x40d   : > { %v908_v29 = vpop.permute.xlu1 %907 }
 0x40e   : > { %1337 = vmatmul.mubr.msk.bf16.vlgmr.msra.gmra.mxu0 %vm571_vm1, %v796_v25  ;;  %v632_v27 = vpack.c.bf16 %v631_v24, %v631_v24 }
 0x40f   : > { %1347 = vmatpush3.bf16.xpose.msra.mxu0 %v915_v26  ;;  %1348 = vmatprep.mubr.msk.bf16.mxu0 %vm1460_vm0, %v1458_v3  ;;  %v1424_v26 = vld [vmem:[%s1757_s5 + $0x38] sm:$0xff]  }
 0x410   : > { %1319 = vmatmul.mubr.msk.bf16.vlgmr.msra.gmra.mxu1 %vm620_vm4, %v632_v27  ;;  %1358 = vmatprep.subr.bf16.mxu0 %v1458_v3  ;;  %v1425_v27 = vld [vmem:[%s1757_s5 + $0x30] sm:$0xff]  }
 0x411   : > { %1323 = vmatpush3.bf16.xpose.msra.mxu1 %v690_v28  ;;  %1324 = vmatprep.mubr.msk.bf16.mxu1 %vm1460_vm0, %v1458_v3  ;;  %v1426_v28 = vld [vmem:[%s1757_s5 + $0x28] sm:$0xff]  }
 0x412   : > { %1328 = vmatprep.subr.bf16.mxu1 %v1458_v3 }
 0x416   : > { %1349 = vmatmul.mubr.msk.bf16.vlgmr.msra.gmra.mxu0 %vm571_vm1, %v908_v29  ;;  %v1427_v29 = vld [vmem:[%s1757_s5 + $0x20] sm:$0xff]  }
 0x417   : > { %1374 = vmatprep.mubr.msk.bf16.mxu0 %vm1460_vm0, %v1458_v3  ;;  %1359 = vmatpush3.bf16.msra.mxu0 %v1424_v26 }
 0x418   : > { %1325 = vmatmul.mubr.msk.bf16.vlgmr.msra.gmra.mxu1 %vm571_vm1, %v682_v18  ;;  %1360 = vmatprep.subr.bf16.mxu0 %v1458_v3 }
 0x419   : > { %1330 = vmatprep.mubr.msk.bf16.mxu1 %vm1460_vm0, %v1458_v3 }
 0x41b   : > { %1361 = vmatpush3.bf16.msra.mxu0 %v1425_v27 }
 0x41c   : > { %1362 = vmatprep.subr.bf16.mxu0 %v1458_v3 }
 0x41f   : > { %1363 = vmatpush3.bf16.msra.mxu0 %v1426_v28 }
 0x420   : > { %1364 = vmatprep.subr.bf16.mxu0 %v1458_v3 }
 0x423   : > { %1365 = vmatpush3.bf16.msra.mxu0 %v1427_v29 }
 0x424   : > { %1366 = vmatprep.subr.bf16.mxu0 %v1458_v3 }
 0x4ce   : > { %v839_v30 = vpop.f32.mrf.mxu0 }
 0x4cf   : > { %v845_v31 = vmul.f32 0.17677669, %v839_v30  ;;  %v1428_v30 = vld [vmem:[%s1757_s5 + $0x18] sm:$0xff]  }
 0x4d0   : > { %v1669_v32 = vpop.f32.mrf.mxu1  ;;  %v1338_v33 = vpop.f32.mrf.mxu0  ;;  %1367 = vmatpush3.bf16.msra.mxu0 %v1428_v30 }
 0x4d1   : > { %v846_v34 = vsel %vm570_vm3, %v845_v31, -1e+30  ;;  %1368 = vmatprep.subr.bf16.mxu0 %v1458_v3  ;;  %v1429_v31 = vld [vmem:[%s1757_s5 + $0x10] sm:$0xff]   ;;  %v1430_v33 = vld [vmem:[%s1757_s5 + $0x8] sm:$0xff]  }
 0x4d2   : > { %v1320_v35 = vpop.f32.mrf.mxu1  ;;  %v842_v36 = vpop.f32.mrf.mxu0  ;;  %v847_v37 = vsel %vm620_vm4, %v846_v34, -inf }
 0x4d3   : > { %848 = vmax.xlane.f32.xlu1 %v847_v37  ;;  %v1431_v36 = vld [vmem:[%s1757_s5] sm:$0xff]  }
 0x4d4   : > { %v677_v38 = vpop.f32.mrf.mxu1  ;;  %v1339_v39 = vpop.f32.mrf.mxu0  ;;  %1369 = vmatpush3.bf16.msra.mxu0 %v1429_v31 }
 0x4d5   : > { %1370 = vmatprep.subr.bf16.mxu0 %v1458_v3 }
 0x4d6   : > { %v1321_v40 = vpop.f32.mrf.mxu1  ;;  %v951_v41 = vpop.f32.mrf.mxu0 }
 0x4d7   : > { %v957_v45 = vmul.f32 0.17677669, %v951_v41 }
 0x4d8   : > { %v726_v43 = vpop.f32.mrf.mxu1  ;;  %v1350_v44 = vpop.f32.mrf.mxu0  ;;  %1371 = vmatpush3.bf16.msra.mxu0 %v1430_v33 }
 0x4d9   : > { %v732_v46 = vmul.f32 0.17677669, %v726_v43  ;;  %v958_v53 = vsel %vm570_vm3, %v957_v45, -1e+30  ;;  %1372 = vmatprep.subr.bf16.mxu0 %v1458_v3 }
 0x4da   : > { %v1326_v47 = vpop.f32.mrf.mxu1  ;;  %v954_v48 = vpop.f32.mrf.mxu0  ;;  %v959_v55 = vsel %vm620_vm4, %v958_v53, -inf }
 0x4db   : > { %v733_v49 = vsel %vm570_vm3, %v732_v46, -1e+30 }
 0x4dc   : > { %v729_v50 = vpop.f32.mrf.mxu1  ;;  %v1351_v51 = vpop.f32.mrf.mxu0  ;;  %v734_v52 = vsel %vm620_vm4, %v733_v49, -inf  ;;  %1373 = vmatpush3.bf16.msra.mxu0 %v1431_v36 }
 0x4dd   : > { %735 = vmax.xlane.f32.xlu0 %v734_v52 }
 0x4de   : > { %v1327_v54 = vpop.f32.mrf.mxu1 }
 0x4e1   : > { %960 = vmax.xlane.f32.xlu0 %v959_v55  ;;  %v1253_v55 = vld [vmem:[%s1758_s6] ss:$0 sm:$0xff] }
 0x55c   : > { %v849_v56 = vpop.xlane.xlu1 %848 }
 0x55d   : > { %v850_v57 = vsub.f32 %v846_v34, %v849_v56 }
 0x55f   : > { %v851_v58 = vmul.f32 1.442695, %v850_v57 }
 0x561   : > { %1438 = vpow2.f32 %v851_v58 }
 0x566   : > { %v736_v59 = vpop.xlane.xlu0 %735 }
 0x567   : > { %v737_v60 = vsub.f32 %v733_v49, %v736_v59 }
 0x569   : > { %v738_v61 = vmul.f32 1.442695, %v737_v60 }
 0x56a   : > { %v961_v62 = vpop.xlane.xlu0 %960 }
 0x56b   : > { %1440 = vpow2.f32 %v738_v61  ;;  %v962_v1 = vsub.f32 %v958_v53, %v961_v62 }
 0x56d   : > { %v963_v2 = vmul.f32 1.442695, %v962_v1 }
 0x56e   : > { %v1439_v5 = vpop.eup %1438 }
 0x56f   : > { %1442 = vpow2.f32 %v963_v2  ;;  %v853_v42 = vsel %vm620_vm4, %v1439_v5, 0.0 }
 0x570   : > { %854 = vadd.xlane.f32.xlu0 %v853_v42 }
 0x578   : > { %v1441_v4 = vpop.eup %1440 }
 0x579   : > { %v740_v6 = vsel %vm620_vm4, %v1441_v4, 0.0 }
 0x57a   : > { %741 = vadd.xlane.f32.xlu0 %v740_v6 }
 0x57c   : > { %v1443_v7 = vpop.eup %1442 }
 0x57d   : > { %v965_v8 = vsel %vm620_vm4, %v1443_v7, 0.0 }
 0x57e   : > { %966 = vadd.xlane.f32.xlu1 %v965_v8 }
 0x58f   : > { %859 = vrot.lane.b32.xlu1 %v1629_v63, %s1463_s23 }
 0x590   : > { %747 = vrot.lane.b32.xlu0 %v1629_v63, %s1461_s21 }
 0x593   : > { %971 = vrot.lane.b32.xlu1 %v1629_v63, %s1462_s22 }
 0x5f9   : > { %v855_v9 = vpop.xlane.xlu0 %854 }
 0x603   : > { %v742_v10 = vpop.xlane.xlu0 %741 }
 0x604   : > { %1444 = vrcp.f32 %v742_v10 }
 0x605   : > { %1446 = vrcp.f32 %v855_v9 }
 0x607   : > { %v748_v11 = vpop.permute.xlu0 %747  ;;  %v967_v13 = vpop.xlane.xlu1 %966 }
 0x608   : > { %v753_v12 = vsel %vm636_vm2, %v748_v11, 0  ;;  %1448 = vrcp.f32 %v967_v13 }
 0x609   : > { %1329 = vmatpush3.bf16.msra.mxu1 %v753_v12 }
 0x60a   : > { %1340 = vmatprep.subr.bf16.mxu1 %v1458_v3 }
 0x60b   : > { %v860_v16 = vpop.permute.xlu1 %859 }
 0x60c   : > { %v865_v19 = vsel %vm636_vm2, %v860_v16, 0 }
 0x60f   : > { %v972_v20 = vpop.permute.xlu1 %971 }
 0x610   : > { %v977_v23 = vsel %vm636_vm2, %v972_v20, 0 }
 0x611   : > { %v1445_v14 = vpop.eup %1444 }
 0x612   : > { %v744_v15 = vmul.f32 %v1445_v14, %v1441_v4  ;;  %v1447_v18 = vpop.eup %1446 }
 0x613   : > { %v857_v63 = vmul.f32 %v1447_v18, %v1439_v5 }
 0x614   : > { %v745_v17 = vpack.c.bf16 %v744_v15, %v744_v15 }
 0x615   : > { %v858_v21 = vpack.c.bf16 %v857_v63, %v857_v63  ;;  %v1449_v22 = vpop.eup %1448 }
 0x616   : > { %1331 = vmatmul.mubr.msk.bf16.vlgmr.msra.gmra.mxu1 %vm620_vm4, %v745_v17  ;;  %v969_v24 = vmul.f32 %v1449_v22, %v1443_v7 }
 0x617   : > { %1341 = vmatpush3.bf16.msra.mxu1 %v865_v19  ;;  %1342 = vmatprep.mubr.msk.bf16.mxu1 %vm1460_vm0, %v1458_v3 }
 0x618   : > { %1352 = vmatprep.subr.bf16.mxu1 %v1458_v3  ;;  %v970_v25 = vpack.c.bf16 %v969_v24, %v969_v24 }
 0x61e   : > { %1343 = vmatmul.mubr.msk.bf16.vlgmr.msra.gmra.mxu1 %vm620_vm4, %v858_v21 }
 0x61f   : > { %1353 = vmatpush3.bf16.msra.mxu1 %v977_v23  ;;  %1354 = vmatprep.mubr.msk.bf16.mxu1 %vm1460_vm0, %v1458_v3 }
 0x626   : > { %1355 = vmatmul.mubr.msk.bf16.vlgmr.msra.gmra.mxu1 %vm620_vm4, %v970_v25 }
 0x6d6   : > { %v789_v34 = vpop.f32.mrf.mxu1 }
 0x6d7   : > { %1020 = vrot.lane.b32.xlu1 %v789_v34, %s1462_s22 }
 0x6d8   : > { %v1332_v35 = vpop.f32.mrf.mxu1 }
 0x6da   : > { %v792_v37 = vpop.f32.mrf.mxu1 }
 0x6dc   : > { %v1333_v38 = vpop.f32.mrf.mxu1 }
 0x6de   : > { %v901_v39 = vpop.f32.mrf.mxu1 }
 0x6df   : > { %1024 = vrot.lane.b32.xlu0 %v901_v39, %s1463_s23 }
 0x6e0   : > { %v1344_v40 = vpop.f32.mrf.mxu1 }
 0x6e2   : > { %v904_v41 = vpop.f32.mrf.mxu1 }
 0x6e4   : > { %v1345_v43 = vpop.f32.mrf.mxu1 }
 0x6e6   : > { %v1013_v44 = vpop.f32.mrf.mxu1 }
 0x6e7   : > { %1028 = vrot.lane.b32.xlu1 %v1013_v44, %s1461_s21 }
 0x6e8   : > { %v1356_v45 = vpop.f32.mrf.mxu1 }
 0x6ea   : > { %v1016_v46 = vpop.f32.mrf.mxu1 }
 0x6ec   : > { %v1357_v3 = vpop.f32.mrf.mxu1 }
 0x749   : > { %v1021_v47 = vpop.permute.xlu1 %1020 }
 0x74a   : > { %v1031_v49 = vsel %vm571_vm1, %v1669_v32, %v1021_v47 }
 0x751   : > { %v1025_v48 = vpop.permute.xlu0 %1024 }
 0x752   : > { %v1033_v50 = vsel %vm1032_vm5, %v1031_v49, %v1025_v48 }
 0x759   : > { %v1029_v51 = vpop.permute.xlu1 %1028 }
 0x75a   : > { %v1035_v52 = vsel %vm1034_vm6, %v1033_v50, %v1029_v51 }
 0x75b   : > { %v1036_v53 = vpack.c.bf16 %v1035_v52, %v1035_v52 }
 0x75d   : > { %1375 = vmatmul.mubr.bf16.vlgmr.msra.gmra.mxu0 %v1036_v53 }
 0x81d   : > { %v1135_v54 = vpop.f32.mrf.mxu0 }
 0x81e   : > { %v1141_v56 = vadd.f32 %v1135_v54, %v1520_v0 }
 0x81f   : > { %v1376_v57 = vpop.f32.mrf.mxu0 }
 0x820   : > { %v1149_v58 = vadd.f32 %v1253_v55, %v1141_v56 }
 0x821   : > { %v1138_v32 = vpop.f32.mrf.mxu0 }
 0x822   : > { %1150 = vst [vmem:[%s273_s27] sm:$0xff] %v1149_v58 }
 0x823   : > { %v1377_v59 = vpop.f32.mrf.mxu0 }
 0x824 PF: > { %s17_s24 = sadd.s32 1, %s1456_s24  }
 0x825   : > { %p14_p4 = scmp.ge.s32.totalorder %s17_s24, 4  }
 0x827   :  { %16 = sbr.rel (!%p14_p4) target bundleno = 1 (0x1), region = 78 }

</bundles_post_ra>
